<compile_context>
chip_gen: v6e
topology: v6e:2x2x1
jax: 0.10.0
libtpu: 0.0.40
codegen_flags: <defaults>
</compile_context>

<pallas_src>
import functools

import jax
import jax.numpy as jnp
from jax import lax
from jax.experimental import pallas as pl
from jax.experimental.pallas import tpu as pltpu


def _round_up(x, m):
    return ((x + m - 1) // m) * m


# ---------------------------------------------------------------------------
# Kernel 1: the sequential recurrence.  grid = (num_time_chunks,), "arbitrary".
# Scalar-prefetched token ids live in SMEM; the input projection is a gather
# of rows of W_ih^T; the hidden state is carried across chunks in VMEM scratch.
# ---------------------------------------------------------------------------
def _recurrence_kernel(batch, t_blk,
                       ids_ref,       # SMEM (seq_pad*batch,) int32  [scalar prefetch]
                       h0_ref,        # VMEM (B_pad, H_pad)
                       wih_t_ref,     # VMEM (V_pad, H_pad)   = W_ih^T (padded)
                       whh_t_ref,     # VMEM (H_pad, H_pad)   = W_hh^T (padded)
                       bias_ref,      # VMEM (1, H_pad)       = b_ih + b_hh (padded)
                       h_all_ref,     # VMEM out (t_blk, B_pad, H_pad)
                       h_carry,       # VMEM scratch (B_pad, H_pad) - persists across chunks
                       x_scratch):    # VMEM scratch (B_pad, H_pad) - gathered input rows
    c = pl.program_id(0)

    @pl.when(c == 0)
    def _():
        h_carry[...] = h0_ref[...]
        x_scratch[...] = jnp.zeros_like(x_scratch)   # keep padded batch rows defined

    whh = whh_t_ref[...]     # hoisted, loop-invariant
    bias = bias_ref[...]

    def step(i, h_prev):
        t = c * t_blk + i
        # Input projection = embedding gather (x_t is one-hot): one row of
        # W_ih^T per batch element, dynamic sublane slice from VMEM.
        for b in range(batch):                              # small static loop
            tok = ids_ref[t * batch + b]
            x_scratch[pl.ds(b, 1), :] = wih_t_ref[pl.ds(tok, 1), :]
        pre = (x_scratch[...] + bias
               + jnp.dot(h_prev, whh, preferred_element_type=jnp.float32))
        h_new = jnp.tanh(pre)
        h_all_ref[i] = h_new
        return h_new

    h_last = lax.fori_loop(0, t_blk, step, h_carry[...], unroll=True)
    h_carry[...] = h_last


# ---------------------------------------------------------------------------
# Kernel 2: the dense head as one big batched, lane-dense matmul ("parallel").
# ---------------------------------------------------------------------------
def _head_kernel(h_ref, wd_t_ref, bd_ref, out_ref):
    out_ref[...] = (jnp.dot(h_ref[...], wd_t_ref[...],
                            preferred_element_type=jnp.float32)
                    + bd_ref[...]).astype(out_ref.dtype)


def rnn_model_forward(inputs, state, params, vocab_size):
    """inputs: int32 (batch, seq); state: (1, batch, hidden).
    Returns (output (seq*batch, vocab), new_state (1, batch, hidden))."""
    batch, seq_len = inputs.shape
    hidden = params["W_hh"].shape[0]

    # --- hardware-tile padding -------------------------------------------
    B_pad = _round_up(batch, 8)
    H_pad = _round_up(hidden, 128)
    V_pad = _round_up(vocab_size, 128)
    T_blk = min(seq_len, 64)                    # time chunk per grid step
    seq_pad = _round_up(seq_len, T_blk)

    # Token ids, time-major, flattened 1D so SMEM padding stays tiny.
    ids = jnp.transpose(inputs).astype(jnp.int32)            # (seq, batch)
    ids = jnp.pad(ids, ((0, seq_pad - seq_len), (0, 0)))      # pad time with token 0
    ids_flat = ids.reshape(-1)                                 # (seq_pad*batch,)

    def pad2(a, r, c):
        return jnp.pad(a, ((0, r - a.shape[0]), (0, c - a.shape[1])))

    f32 = jnp.float32
    wih_t = pad2(params["W_ih"].T.astype(f32), V_pad, H_pad)               # (V_pad, H_pad)
    whh_t = pad2(params["W_hh"].T.astype(f32), H_pad, H_pad)               # (H_pad, H_pad)
    bias = pad2((params["b_ih"] + params["b_hh"]).reshape(1, hidden).astype(f32),
                1, H_pad)                                                   # (1, H_pad)
    wd_t = pad2(params["W_dense"].T.astype(f32), H_pad, V_pad)             # (H_pad, V_pad)
    bd = pad2(params["b_dense"].reshape(1, vocab_size).astype(f32), 1, V_pad)
    h0 = pad2(state[0].astype(f32), B_pad, H_pad)                          # (B_pad, H_pad)

    def const(shape):
        return pl.BlockSpec(shape, lambda c, ids_ref, _s=shape: tuple(0 for _ in _s))

    # --- recurrence: all timesteps in one kernel, chunked writeback --------
    h_all = pl.pallas_call(
        functools.partial(_recurrence_kernel, batch, T_blk),
        out_shape=jax.ShapeDtypeStruct((seq_pad, B_pad, H_pad), jnp.float32),
        grid_spec=pltpu.PrefetchScalarGridSpec(
            num_scalar_prefetch=1,
            grid=(seq_pad // T_blk,),
            in_specs=[
                const((B_pad, H_pad)),     # h0
                const((V_pad, H_pad)),     # W_ih^T
                const((H_pad, H_pad)),     # W_hh^T
                const((1, H_pad)),         # b_ih + b_hh
            ],
            out_specs=pl.BlockSpec((T_blk, B_pad, H_pad),
                                   lambda c, ids_ref: (c, 0, 0)),
            scratch_shapes=[pltpu.VMEM((B_pad, H_pad), jnp.float32),   # h carry
                            pltpu.VMEM((B_pad, H_pad), jnp.float32)],  # gathered x rows
        ),
        compiler_params=pltpu.CompilerParams(
            dimension_semantics=("arbitrary",)),   # time is sequential (state carry)
    )(ids_flat, h0, wih_t, whh_t, bias)

    # --- dense head: single big (M,128)@(128,128) matmul, parallel grid ----
    M = seq_pad * B_pad
    bm = 128
    M_pad = _round_up(M, bm)
    h_flat = h_all.reshape(M, H_pad)
    if M_pad != M:
        h_flat = jnp.pad(h_flat, ((0, M_pad - M), (0, 0)))

    logits_p = pl.pallas_call(
        _head_kernel,
        out_shape=jax.ShapeDtypeStruct((M_pad, V_pad), jnp.float32),
        grid=(M_pad // bm,),
        in_specs=[pl.BlockSpec((bm, H_pad), lambda i: (i, 0)),
                  pl.BlockSpec((H_pad, V_pad), lambda i: (0, 0)),
                  pl.BlockSpec((1, V_pad), lambda i: (0, 0))],
        out_specs=pl.BlockSpec((bm, V_pad), lambda i: (i, 0)),
        compiler_params=pltpu.CompilerParams(
            dimension_semantics=("parallel",)),    # shards across v7x's 2 TCs
    )(h_flat, wd_t, bd)

    # --- strip padding (glue) ----------------------------------------------
    logits = (logits_p[:M].reshape(seq_pad, B_pad, V_pad)
              [:seq_len, :batch, :vocab_size])
    output = logits.reshape(seq_len * batch, vocab_size)
    h_n = h_all[seq_len - 1, :batch, :hidden][None]            # (1, batch, hidden)
    return output, h_n


# ---------------------------------------------------------------------------
# Pure-JAX reference (mirrors the PyTorch forward) and a tiny driver.
# ---------------------------------------------------------------------------
def _reference_forward(inputs, state, params, vocab_size):
    x = jax.nn.one_hot(inputs.T, vocab_size, dtype=jnp.float32)  # (seq, batch, vocab)

    def step(h, x_t):
        h_new = jnp.tanh(x_t @ params["W_ih"].T + params["b_ih"]
                         + h @ params["W_hh"].T + params["b_hh"])
        return h_new, h_new

    h_last, ys = lax.scan(step, state[0], x)
    out = ys.reshape(-1, ys.shape[-1]) @ params["W_dense"].T + params["b_dense"]
    return out, h_last[None]


def init_params(key, vocab_size, hidden_size):
    k = jax.random.split(key, 6)
    s = 1.0 / jnp.sqrt(hidden_size)
    u = lambda kk, shape: jax.random.uniform(kk, shape, jnp.float32, -s, s)
    return {
        "W_ih": u(k[0], (hidden_size, vocab_size)),
        "W_hh": u(k[1], (hidden_size, hidden_size)),
        "b_ih": u(k[2], (hidden_size,)),
        "b_hh": u(k[3], (hidden_size,)),
        "W_dense": u(k[4], (vocab_size, hidden_size)),
        "b_dense": u(k[5], (vocab_size,)),
    }


if __name__ == "__main__":
    vocab_size, hidden_size = 32, 32
    batch, seq_len = 4, 8

    key = jax.random.PRNGKey(0)
    kp, ki, ks = jax.random.split(key, 3)

    params = init_params(kp, vocab_size, hidden_size)
    inputs = jax.random.randint(ki, (batch, seq_len), 0, vocab_size, dtype=jnp.int32)
    state = jax.random.normal(ks, (1, batch, hidden_size), dtype=jnp.float32)

    out, new_state = rnn_model_forward(inputs, state, params, vocab_size)
    out = jax.block_until_ready(out)
    new_state = jax.block_until_ready(new_state)

    ref_out, ref_state = _reference_forward(inputs, state, params, vocab_size)
    assert out.shape == (seq_len * batch, vocab_size)
    assert new_state.shape == (1, batch, hidden_size)
    assert jnp.allclose(out, ref_out, atol=1e-5, rtol=1e-5)
    assert jnp.allclose(new_state, ref_state, atol=1e-5, rtol=1e-5)

    print("KERNEL_OK")
</pallas_src>

<mosaic_0001>
module attributes {stable_mosaic.version = 11 : i64} {
  func.func @_recurrence_kernel(%arg0: i32, %arg1: memref<32xi32, #tpu.memory_space<smem>>, %arg2: memref<8x128xf32, #tpu.memory_space<vmem>>, %arg3: memref<128x128xf32, #tpu.memory_space<vmem>>, %arg4: memref<128x128xf32, #tpu.memory_space<vmem>>, %arg5: memref<1x128xf32, #tpu.memory_space<vmem>>, %arg6: memref<8x8x128xf32, #tpu.memory_space<vmem>>, %arg7: memref<8x128xf32, #tpu.memory_space<vmem>>, %arg8: memref<8x128xf32, #tpu.memory_space<vmem>>) attributes {dimension_semantics = [#tpu.dimension_semantics<arbitrary>], iteration_bounds = array<i64: 1>, scalar_prefetch = 1 : i64, scratch_operands = 2 : i64, tpu.core_type = #tpu.core_type<tc>, window_params = [{pipeline_mode = #tpu.pipeline_mode<synchronous>, transform_indices = @transform_0, window_bounds = array<i64: 8, 128>}, {pipeline_mode = #tpu.pipeline_mode<synchronous>, transform_indices = @transform_1, window_bounds = array<i64: 128, 128>}, {pipeline_mode = #tpu.pipeline_mode<synchronous>, transform_indices = @transform_2, window_bounds = array<i64: 128, 128>}, {pipeline_mode = #tpu.pipeline_mode<synchronous>, transform_indices = @transform_3, window_bounds = array<i64: 1, 128>}, {transform_indices = @transform_4, window_bounds = array<i64: 8, 8, 128>}]} {
    %c0_i32 = arith.constant 0 : i32
    %0 = arith.cmpi eq, %arg0, %c0_i32 : i32
    %1 = arith.extui %0 : i1 to i32
    %c0_i32_0 = arith.constant 0 : i32
    %2 = arith.cmpi ne, %1, %c0_i32_0 : i32
    scf.if %2 {
      %c0_213 = arith.constant 0 : index
      %c0_214 = arith.constant 0 : index
      %327 = vector.load %arg2[%c0_213, %c0_214] : memref<8x128xf32, #tpu.memory_space<vmem>>, vector<8x128xf32>
      %c0_215 = arith.constant 0 : index
      %c0_216 = arith.constant 0 : index
      %328 = vector.load %arg7[%c0_215, %c0_216] : memref<8x128xf32, #tpu.memory_space<vmem>>, vector<8x128xf32>
      tpu.vector_store %arg7[%c0_215, %c0_216], %327 {strides = array<i32>} : memref<8x128xf32, #tpu.memory_space<vmem>>, vector<8x128xf32>,
      %cst_217 = arith.constant 0.000000e+00 : f32
      %329 = vector.broadcast %cst_217 : f32 to vector<8x128xf32>
      %c0_218 = arith.constant 0 : index
      %c0_219 = arith.constant 0 : index
      %330 = vector.load %arg8[%c0_218, %c0_219] : memref<8x128xf32, #tpu.memory_space<vmem>>, vector<8x128xf32>
      tpu.vector_store %arg8[%c0_218, %c0_219], %329 {strides = array<i32>} : memref<8x128xf32, #tpu.memory_space<vmem>>, vector<8x128xf32>,
    } else {
    }
    %c0 = arith.constant 0 : index
    %c0_1 = arith.constant 0 : index
    %3 = vector.load %arg4[%c0, %c0_1] : memref<128x128xf32, #tpu.memory_space<vmem>>, vector<128x128xf32>
    %c0_2 = arith.constant 0 : index
    %c0_3 = arith.constant 0 : index
    %4 = vector.load %arg5[%c0_2, %c0_3] : memref<1x128xf32, #tpu.memory_space<vmem>>, vector<1x128xf32>
    %c0_4 = arith.constant 0 : index
    %c0_5 = arith.constant 0 : index
    %5 = vector.load %arg7[%c0_4, %c0_5] : memref<8x128xf32, #tpu.memory_space<vmem>>, vector<8x128xf32>
    %c0_i32_6 = arith.constant 0 : i32
    %c8_i32 = arith.constant 8 : i32
    %6 = arith.muli %arg0, %c8_i32 : i32
    %7 = arith.addi %6, %c0_i32_6 : i32
    %c4_i32 = arith.constant 4 : i32
    %8 = arith.muli %7, %c4_i32 : i32
    %c0_i32_7 = arith.constant 0 : i32
    %9 = arith.addi %8, %c0_i32_7 : i32
    %10 = arith.index_cast %9 : i32 to index
    %11 = memref.load %arg1[%10] : memref<32xi32, #tpu.memory_space<smem>>
    %12 = arith.index_cast %11 : i32 to index
    %c0_8 = arith.constant 0 : index
    %13 = vector.load %arg3[%12, %c0_8] : memref<128x128xf32, #tpu.memory_space<vmem>>, vector<1x128xf32>
    %c0_9 = arith.constant 0 : index
    %c0_10 = arith.constant 0 : index
    %14 = vector.load %arg8[%c0_9, %c0_10] : memref<8x128xf32, #tpu.memory_space<vmem>>, vector<1x128xf32>
    tpu.vector_store %arg8[%c0_9, %c0_10], %13 {strides = array<i32>} : memref<8x128xf32, #tpu.memory_space<vmem>>, vector<1x128xf32>,
    %c4_i32_11 = arith.constant 4 : i32
    %15 = arith.muli %7, %c4_i32_11 : i32
    %c1_i32 = arith.constant 1 : i32
    %16 = arith.addi %15, %c1_i32 : i32
    %17 = arith.index_cast %16 : i32 to index
    %18 = memref.load %arg1[%17] : memref<32xi32, #tpu.memory_space<smem>>
    %19 = arith.index_cast %18 : i32 to index
    %c0_12 = arith.constant 0 : index
    %20 = vector.load %arg3[%19, %c0_12] : memref<128x128xf32, #tpu.memory_space<vmem>>, vector<1x128xf32>
    %c1 = arith.constant 1 : index
    %c0_13 = arith.constant 0 : index
    %21 = vector.load %arg8[%c1, %c0_13] : memref<8x128xf32, #tpu.memory_space<vmem>>, vector<1x128xf32>
    tpu.vector_store %arg8[%c1, %c0_13], %20 {strides = array<i32>} : memref<8x128xf32, #tpu.memory_space<vmem>>, vector<1x128xf32>,
    %c4_i32_14 = arith.constant 4 : i32
    %22 = arith.muli %7, %c4_i32_14 : i32
    %c2_i32 = arith.constant 2 : i32
    %23 = arith.addi %22, %c2_i32 : i32
    %24 = arith.index_cast %23 : i32 to index
    %25 = memref.load %arg1[%24] : memref<32xi32, #tpu.memory_space<smem>>
    %26 = arith.index_cast %25 : i32 to index
    %c0_15 = arith.constant 0 : index
    %27 = vector.load %arg3[%26, %c0_15] : memref<128x128xf32, #tpu.memory_space<vmem>>, vector<1x128xf32>
    %c2 = arith.constant 2 : index
    %c0_16 = arith.constant 0 : index
    %28 = vector.load %arg8[%c2, %c0_16] : memref<8x128xf32, #tpu.memory_space<vmem>>, vector<1x128xf32>
    tpu.vector_store %arg8[%c2, %c0_16], %27 {strides = array<i32>} : memref<8x128xf32, #tpu.memory_space<vmem>>, vector<1x128xf32>,
    %c4_i32_17 = arith.constant 4 : i32
    %29 = arith.muli %7, %c4_i32_17 : i32
    %c3_i32 = arith.constant 3 : i32
    %30 = arith.addi %29, %c3_i32 : i32
    %31 = arith.index_cast %30 : i32 to index
    %32 = memref.load %arg1[%31] : memref<32xi32, #tpu.memory_space<smem>>
    %33 = arith.index_cast %32 : i32 to index
    %c0_18 = arith.constant 0 : index
    %34 = vector.load %arg3[%33, %c0_18] : memref<128x128xf32, #tpu.memory_space<vmem>>, vector<1x128xf32>
    %c3 = arith.constant 3 : index
    %c0_19 = arith.constant 0 : index
    %35 = vector.load %arg8[%c3, %c0_19] : memref<8x128xf32, #tpu.memory_space<vmem>>, vector<1x128xf32>
    tpu.vector_store %arg8[%c3, %c0_19], %34 {strides = array<i32>} : memref<8x128xf32, #tpu.memory_space<vmem>>, vector<1x128xf32>,
    %c0_20 = arith.constant 0 : index
    %c0_21 = arith.constant 0 : index
    %36 = vector.load %arg8[%c0_20, %c0_21] : memref<8x128xf32, #tpu.memory_space<vmem>>, vector<8x128xf32>
    %37 = vector.broadcast %4 : vector<1x128xf32> to vector<8x128xf32>
    %38 = arith.addf %36, %37 : vector<8x128xf32>
    %cst = arith.constant dense<0.000000e+00> : vector<8x128xf32>
    %39 = tpu.matmul %5, %3, %cst {dimension_numbers = #tpu.dot_dimension_numbers<[1], [0], [0], [1], [0, 0, 1, 1], [], []>} : vector<8x128xf32>, vector<128x128xf32>, vector<8x128xf32> -> vector<8x128xf32>
    %40 = arith.addf %38, %39 : vector<8x128xf32>
    %41 = math.tanh %40 : vector<8x128xf32>
    %42 = arith.index_cast %c0_i32_6 : i32 to index
    %c0_22 = arith.constant 0 : index
    %c0_23 = arith.constant 0 : index
    %43 = vector.load %arg6[%42, %c0_22, %c0_23] : memref<8x8x128xf32, #tpu.memory_space<vmem>>, vector<1x8x128xf32>
    %44 = vector.shape_cast %43 : vector<1x8x128xf32> to vector<8x128xf32>
    %45 = vector.shape_cast %41 : vector<8x128xf32> to vector<1x8x128xf32>
    tpu.vector_store %arg6[%42, %c0_22, %c0_23], %45 {strides = array<i32>} : memref<8x8x128xf32, #tpu.memory_space<vmem>>, vector<1x8x128xf32>,
    %c1_i32_24 = arith.constant 1 : i32
    %c8_i32_25 = arith.constant 8 : i32
    %46 = arith.muli %arg0, %c8_i32_25 : i32
    %47 = arith.addi %46, %c1_i32_24 : i32
    %c4_i32_26 = arith.constant 4 : i32
    %48 = arith.muli %47, %c4_i32_26 : i32
    %c0_i32_27 = arith.constant 0 : i32
    %49 = arith.addi %48, %c0_i32_27 : i32
    %50 = arith.index_cast %49 : i32 to index
    %51 = memref.load %arg1[%50] : memref<32xi32, #tpu.memory_space<smem>>
    %52 = arith.index_cast %51 : i32 to index
    %c0_28 = arith.constant 0 : index
    %53 = vector.load %arg3[%52, %c0_28] : memref<128x128xf32, #tpu.memory_space<vmem>>, vector<1x128xf32>
    %c0_29 = arith.constant 0 : index
    %c0_30 = arith.constant 0 : index
    %54 = vector.load %arg8[%c0_29, %c0_30] : memref<8x128xf32, #tpu.memory_space<vmem>>, vector<1x128xf32>
    tpu.vector_store %arg8[%c0_29, %c0_30], %53 {strides = array<i32>} : memref<8x128xf32, #tpu.memory_space<vmem>>, vector<1x128xf32>,
    %c4_i32_31 = arith.constant 4 : i32
    %55 = arith.muli %47, %c4_i32_31 : i32
    %c1_i32_32 = arith.constant 1 : i32
    %56 = arith.addi %55, %c1_i32_32 : i32
    %57 = arith.index_cast %56 : i32 to index
    %58 = memref.load %arg1[%57] : memref<32xi32, #tpu.memory_space<smem>>
    %59 = arith.index_cast %58 : i32 to index
    %c0_33 = arith.constant 0 : index
    %60 = vector.load %arg3[%59, %c0_33] : memref<128x128xf32, #tpu.memory_space<vmem>>, vector<1x128xf32>
    %c1_34 = arith.constant 1 : index
    %c0_35 = arith.constant 0 : index
    %61 = vector.load %arg8[%c1_34, %c0_35] : memref<8x128xf32, #tpu.memory_space<vmem>>, vector<1x128xf32>
    tpu.vector_store %arg8[%c1_34, %c0_35], %60 {strides = array<i32>} : memref<8x128xf32, #tpu.memory_space<vmem>>, vector<1x128xf32>,
    %c4_i32_36 = arith.constant 4 : i32
    %62 = arith.muli %47, %c4_i32_36 : i32
    %c2_i32_37 = arith.constant 2 : i32
    %63 = arith.addi %62, %c2_i32_37 : i32
    %64 = arith.index_cast %63 : i32 to index
    %65 = memref.load %arg1[%64] : memref<32xi32, #tpu.memory_space<smem>>
    %66 = arith.index_cast %65 : i32 to index
    %c0_38 = arith.constant 0 : index
    %67 = vector.load %arg3[%66, %c0_38] : memref<128x128xf32, #tpu.memory_space<vmem>>, vector<1x128xf32>
    %c2_39 = arith.constant 2 : index
    %c0_40 = arith.constant 0 : index
    %68 = vector.load %arg8[%c2_39, %c0_40] : memref<8x128xf32, #tpu.memory_space<vmem>>, vector<1x128xf32>
    tpu.vector_store %arg8[%c2_39, %c0_40], %67 {strides = array<i32>} : memref<8x128xf32, #tpu.memory_space<vmem>>, vector<1x128xf32>,
    %c4_i32_41 = arith.constant 4 : i32
    %69 = arith.muli %47, %c4_i32_41 : i32
    %c3_i32_42 = arith.constant 3 : i32
    %70 = arith.addi %69, %c3_i32_42 : i32
    %71 = arith.index_cast %70 : i32 to index
    %72 = memref.load %arg1[%71] : memref<32xi32, #tpu.memory_space<smem>>
    %73 = arith.index_cast %72 : i32 to index
    %c0_43 = arith.constant 0 : index
    %74 = vector.load %arg3[%73, %c0_43] : memref<128x128xf32, #tpu.memory_space<vmem>>, vector<1x128xf32>
    %c3_44 = arith.constant 3 : index
    %c0_45 = arith.constant 0 : index
    %75 = vector.load %arg8[%c3_44, %c0_45] : memref<8x128xf32, #tpu.memory_space<vmem>>, vector<1x128xf32>
    tpu.vector_store %arg8[%c3_44, %c0_45], %74 {strides = array<i32>} : memref<8x128xf32, #tpu.memory_space<vmem>>, vector<1x128xf32>,
    %c0_46 = arith.constant 0 : index
    %c0_47 = arith.constant 0 : index
    %76 = vector.load %arg8[%c0_46, %c0_47] : memref<8x128xf32, #tpu.memory_space<vmem>>, vector<8x128xf32>
    %77 = vector.broadcast %4 : vector<1x128xf32> to vector<8x128xf32>
    %78 = arith.addf %76, %77 : vector<8x128xf32>
    %cst_48 = arith.constant dense<0.000000e+00> : vector<8x128xf32>
    %79 = tpu.matmul %41, %3, %cst_48 {dimension_numbers = #tpu.dot_dimension_numbers<[1], [0], [0], [1], [0, 0, 1, 1], [], []>} : vector<8x128xf32>, vector<128x128xf32>, vector<8x128xf32> -> vector<8x128xf32>
    %80 = arith.addf %78, %79 : vector<8x128xf32>
    %81 = math.tanh %80 : vector<8x128xf32>
    %82 = arith.index_cast %c1_i32_24 : i32 to index
    %c0_49 = arith.constant 0 : index
    %c0_50 = arith.constant 0 : index
    %83 = vector.load %arg6[%82, %c0_49, %c0_50] : memref<8x8x128xf32, #tpu.memory_space<vmem>>, vector<1x8x128xf32>
    %84 = vector.shape_cast %83 : vector<1x8x128xf32> to vector<8x128xf32>
    %85 = vector.shape_cast %81 : vector<8x128xf32> to vector<1x8x128xf32>
    tpu.vector_store %arg6[%82, %c0_49, %c0_50], %85 {strides = array<i32>} : memref<8x8x128xf32, #tpu.memory_space<vmem>>, vector<1x8x128xf32>,
    %c2_i32_51 = arith.constant 2 : i32
    %c8_i32_52 = arith.constant 8 : i32
    %86 = arith.muli %arg0, %c8_i32_52 : i32
    %87 = arith.addi %86, %c2_i32_51 : i32
    %c4_i32_53 = arith.constant 4 : i32
    %88 = arith.muli %87, %c4_i32_53 : i32
    %c0_i32_54 = arith.constant 0 : i32
    %89 = arith.addi %88, %c0_i32_54 : i32
    %90 = arith.index_cast %89 : i32 to index
    %91 = memref.load %arg1[%90] : memref<32xi32, #tpu.memory_space<smem>>
    %92 = arith.index_cast %91 : i32 to index
    %c0_55 = arith.constant 0 : index
    %93 = vector.load %arg3[%92, %c0_55] : memref<128x128xf32, #tpu.memory_space<vmem>>, vector<1x128xf32>
    %c0_56 = arith.constant 0 : index
    %c0_57 = arith.constant 0 : index
    %94 = vector.load %arg8[%c0_56, %c0_57] : memref<8x128xf32, #tpu.memory_space<vmem>>, vector<1x128xf32>
    tpu.vector_store %arg8[%c0_56, %c0_57], %93 {strides = array<i32>} : memref<8x128xf32, #tpu.memory_space<vmem>>, vector<1x128xf32>,
    %c4_i32_58 = arith.constant 4 : i32
    %95 = arith.muli %87, %c4_i32_58 : i32
    %c1_i32_59 = arith.constant 1 : i32
    %96 = arith.addi %95, %c1_i32_59 : i32
    %97 = arith.index_cast %96 : i32 to index
    %98 = memref.load %arg1[%97] : memref<32xi32, #tpu.memory_space<smem>>
    %99 = arith.index_cast %98 : i32 to index
    %c0_60 = arith.constant 0 : index
    %100 = vector.load %arg3[%99, %c0_60] : memref<128x128xf32, #tpu.memory_space<vmem>>, vector<1x128xf32>
    %c1_61 = arith.constant 1 : index
    %c0_62 = arith.constant 0 : index
    %101 = vector.load %arg8[%c1_61, %c0_62] : memref<8x128xf32, #tpu.memory_space<vmem>>, vector<1x128xf32>
    tpu.vector_store %arg8[%c1_61, %c0_62], %100 {strides = array<i32>} : memref<8x128xf32, #tpu.memory_space<vmem>>, vector<1x128xf32>,
    %c4_i32_63 = arith.constant 4 : i32
    %102 = arith.muli %87, %c4_i32_63 : i32
    %c2_i32_64 = arith.constant 2 : i32
    %103 = arith.addi %102, %c2_i32_64 : i32
    %104 = arith.index_cast %103 : i32 to index
    %105 = memref.load %arg1[%104] : memref<32xi32, #tpu.memory_space<smem>>
    %106 = arith.index_cast %105 : i32 to index
    %c0_65 = arith.constant 0 : index
    %107 = vector.load %arg3[%106, %c0_65] : memref<128x128xf32, #tpu.memory_space<vmem>>, vector<1x128xf32>
    %c2_66 = arith.constant 2 : index
    %c0_67 = arith.constant 0 : index
    %108 = vector.load %arg8[%c2_66, %c0_67] : memref<8x128xf32, #tpu.memory_space<vmem>>, vector<1x128xf32>
    tpu.vector_store %arg8[%c2_66, %c0_67], %107 {strides = array<i32>} : memref<8x128xf32, #tpu.memory_space<vmem>>, vector<1x128xf32>,
    %c4_i32_68 = arith.constant 4 : i32
    %109 = arith.muli %87, %c4_i32_68 : i32
    %c3_i32_69 = arith.constant 3 : i32
    %110 = arith.addi %109, %c3_i32_69 : i32
    %111 = arith.index_cast %110 : i32 to index
    %112 = memref.load %arg1[%111] : memref<32xi32, #tpu.memory_space<smem>>
    %113 = arith.index_cast %112 : i32 to index
    %c0_70 = arith.constant 0 : index
    %114 = vector.load %arg3[%113, %c0_70] : memref<128x128xf32, #tpu.memory_space<vmem>>, vector<1x128xf32>
    %c3_71 = arith.constant 3 : index
    %c0_72 = arith.constant 0 : index
    %115 = vector.load %arg8[%c3_71, %c0_72] : memref<8x128xf32, #tpu.memory_space<vmem>>, vector<1x128xf32>
    tpu.vector_store %arg8[%c3_71, %c0_72], %114 {strides = array<i32>} : memref<8x128xf32, #tpu.memory_space<vmem>>, vector<1x128xf32>,
    %c0_73 = arith.constant 0 : index
    %c0_74 = arith.constant 0 : index
    %116 = vector.load %arg8[%c0_73, %c0_74] : memref<8x128xf32, #tpu.memory_space<vmem>>, vector<8x128xf32>
    %117 = vector.broadcast %4 : vector<1x128xf32> to vector<8x128xf32>
    %118 = arith.addf %116, %117 : vector<8x128xf32>
    %cst_75 = arith.constant dense<0.000000e+00> : vector<8x128xf32>
    %119 = tpu.matmul %81, %3, %cst_75 {dimension_numbers = #tpu.dot_dimension_numbers<[1], [0], [0], [1], [0, 0, 1, 1], [], []>} : vector<8x128xf32>, vector<128x128xf32>, vector<8x128xf32> -> vector<8x128xf32>
    %120 = arith.addf %118, %119 : vector<8x128xf32>
    %121 = math.tanh %120 : vector<8x128xf32>
    %122 = arith.index_cast %c2_i32_51 : i32 to index
    %c0_76 = arith.constant 0 : index
    %c0_77 = arith.constant 0 : index
    %123 = vector.load %arg6[%122, %c0_76, %c0_77] : memref<8x8x128xf32, #tpu.memory_space<vmem>>, vector<1x8x128xf32>
    %124 = vector.shape_cast %123 : vector<1x8x128xf32> to vector<8x128xf32>
    %125 = vector.shape_cast %121 : vector<8x128xf32> to vector<1x8x128xf32>
    tpu.vector_store %arg6[%122, %c0_76, %c0_77], %125 {strides = array<i32>} : memref<8x8x128xf32, #tpu.memory_space<vmem>>, vector<1x8x128xf32>,
    %c3_i32_78 = arith.constant 3 : i32
    %c8_i32_79 = arith.constant 8 : i32
    %126 = arith.muli %arg0, %c8_i32_79 : i32
    %127 = arith.addi %126, %c3_i32_78 : i32
    %c4_i32_80 = arith.constant 4 : i32
    %128 = arith.muli %127, %c4_i32_80 : i32
    %c0_i32_81 = arith.constant 0 : i32
    %129 = arith.addi %128, %c0_i32_81 : i32
    %130 = arith.index_cast %129 : i32 to index
    %131 = memref.load %arg1[%130] : memref<32xi32, #tpu.memory_space<smem>>
    %132 = arith.index_cast %131 : i32 to index
    %c0_82 = arith.constant 0 : index
    %133 = vector.load %arg3[%132, %c0_82] : memref<128x128xf32, #tpu.memory_space<vmem>>, vector<1x128xf32>
    %c0_83 = arith.constant 0 : index
    %c0_84 = arith.constant 0 : index
    %134 = vector.load %arg8[%c0_83, %c0_84] : memref<8x128xf32, #tpu.memory_space<vmem>>, vector<1x128xf32>
    tpu.vector_store %arg8[%c0_83, %c0_84], %133 {strides = array<i32>} : memref<8x128xf32, #tpu.memory_space<vmem>>, vector<1x128xf32>,
    %c4_i32_85 = arith.constant 4 : i32
    %135 = arith.muli %127, %c4_i32_85 : i32
    %c1_i32_86 = arith.constant 1 : i32
    %136 = arith.addi %135, %c1_i32_86 : i32
    %137 = arith.index_cast %136 : i32 to index
    %138 = memref.load %arg1[%137] : memref<32xi32, #tpu.memory_space<smem>>
    %139 = arith.index_cast %138 : i32 to index
    %c0_87 = arith.constant 0 : index
    %140 = vector.load %arg3[%139, %c0_87] : memref<128x128xf32, #tpu.memory_space<vmem>>, vector<1x128xf32>
    %c1_88 = arith.constant 1 : index
    %c0_89 = arith.constant 0 : index
    %141 = vector.load %arg8[%c1_88, %c0_89] : memref<8x128xf32, #tpu.memory_space<vmem>>, vector<1x128xf32>
    tpu.vector_store %arg8[%c1_88, %c0_89], %140 {strides = array<i32>} : memref<8x128xf32, #tpu.memory_space<vmem>>, vector<1x128xf32>,
    %c4_i32_90 = arith.constant 4 : i32
    %142 = arith.muli %127, %c4_i32_90 : i32
    %c2_i32_91 = arith.constant 2 : i32
    %143 = arith.addi %142, %c2_i32_91 : i32
    %144 = arith.index_cast %143 : i32 to index
    %145 = memref.load %arg1[%144] : memref<32xi32, #tpu.memory_space<smem>>
    %146 = arith.index_cast %145 : i32 to index
    %c0_92 = arith.constant 0 : index
    %147 = vector.load %arg3[%146, %c0_92] : memref<128x128xf32, #tpu.memory_space<vmem>>, vector<1x128xf32>
    %c2_93 = arith.constant 2 : index
    %c0_94 = arith.constant 0 : index
    %148 = vector.load %arg8[%c2_93, %c0_94] : memref<8x128xf32, #tpu.memory_space<vmem>>, vector<1x128xf32>
    tpu.vector_store %arg8[%c2_93, %c0_94], %147 {strides = array<i32>} : memref<8x128xf32, #tpu.memory_space<vmem>>, vector<1x128xf32>,
    %c4_i32_95 = arith.constant 4 : i32
    %149 = arith.muli %127, %c4_i32_95 : i32
    %c3_i32_96 = arith.constant 3 : i32
    %150 = arith.addi %149, %c3_i32_96 : i32
    %151 = arith.index_cast %150 : i32 to index
    %152 = memref.load %arg1[%151] : memref<32xi32, #tpu.memory_space<smem>>
    %153 = arith.index_cast %152 : i32 to index
    %c0_97 = arith.constant 0 : index
    %154 = vector.load %arg3[%153, %c0_97] : memref<128x128xf32, #tpu.memory_space<vmem>>, vector<1x128xf32>
    %c3_98 = arith.constant 3 : index
    %c0_99 = arith.constant 0 : index
    %155 = vector.load %arg8[%c3_98, %c0_99] : memref<8x128xf32, #tpu.memory_space<vmem>>, vector<1x128xf32>
    tpu.vector_store %arg8[%c3_98, %c0_99], %154 {strides = array<i32>} : memref<8x128xf32, #tpu.memory_space<vmem>>, vector<1x128xf32>,
    %c0_100 = arith.constant 0 : index
    %c0_101 = arith.constant 0 : index
    %156 = vector.load %arg8[%c0_100, %c0_101] : memref<8x128xf32, #tpu.memory_space<vmem>>, vector<8x128xf32>
    %157 = vector.broadcast %4 : vector<1x128xf32> to vector<8x128xf32>
    %158 = arith.addf %156, %157 : vector<8x128xf32>
    %cst_102 = arith.constant dense<0.000000e+00> : vector<8x128xf32>
    %159 = tpu.matmul %121, %3, %cst_102 {dimension_numbers = #tpu.dot_dimension_numbers<[1], [0], [0], [1], [0, 0, 1, 1], [], []>} : vector<8x128xf32>, vector<128x128xf32>, vector<8x128xf32> -> vector<8x128xf32>
    %160 = arith.addf %158, %159 : vector<8x128xf32>
    %161 = math.tanh %160 : vector<8x128xf32>
    %162 = arith.index_cast %c3_i32_78 : i32 to index
    %c0_103 = arith.constant 0 : index
    %c0_104 = arith.constant 0 : index
    %163 = vector.load %arg6[%162, %c0_103, %c0_104] : memref<8x8x128xf32, #tpu.memory_space<vmem>>, vector<1x8x128xf32>
    %164 = vector.shape_cast %163 : vector<1x8x128xf32> to vector<8x128xf32>
    %165 = vector.shape_cast %161 : vector<8x128xf32> to vector<1x8x128xf32>
    tpu.vector_store %arg6[%162, %c0_103, %c0_104], %165 {strides = array<i32>} : memref<8x8x128xf32, #tpu.memory_space<vmem>>, vector<1x8x128xf32>,
    %c4_i32_105 = arith.constant 4 : i32
    %c8_i32_106 = arith.constant 8 : i32
    %166 = arith.muli %arg0, %c8_i32_106 : i32
    %167 = arith.addi %166, %c4_i32_105 : i32
    %c4_i32_107 = arith.constant 4 : i32
    %168 = arith.muli %167, %c4_i32_107 : i32
    %c0_i32_108 = arith.constant 0 : i32
    %169 = arith.addi %168, %c0_i32_108 : i32
    %170 = arith.index_cast %169 : i32 to index
    %171 = memref.load %arg1[%170] : memref<32xi32, #tpu.memory_space<smem>>
    %172 = arith.index_cast %171 : i32 to index
    %c0_109 = arith.constant 0 : index
    %173 = vector.load %arg3[%172, %c0_109] : memref<128x128xf32, #tpu.memory_space<vmem>>, vector<1x128xf32>
    %c0_110 = arith.constant 0 : index
    %c0_111 = arith.constant 0 : index
    %174 = vector.load %arg8[%c0_110, %c0_111] : memref<8x128xf32, #tpu.memory_space<vmem>>, vector<1x128xf32>
    tpu.vector_store %arg8[%c0_110, %c0_111], %173 {strides = array<i32>} : memref<8x128xf32, #tpu.memory_space<vmem>>, vector<1x128xf32>,
    %c4_i32_112 = arith.constant 4 : i32
    %175 = arith.muli %167, %c4_i32_112 : i32
    %c1_i32_113 = arith.constant 1 : i32
    %176 = arith.addi %175, %c1_i32_113 : i32
    %177 = arith.index_cast %176 : i32 to index
    %178 = memref.load %arg1[%177] : memref<32xi32, #tpu.memory_space<smem>>
    %179 = arith.index_cast %178 : i32 to index
    %c0_114 = arith.constant 0 : index
    %180 = vector.load %arg3[%179, %c0_114] : memref<128x128xf32, #tpu.memory_space<vmem>>, vector<1x128xf32>
    %c1_115 = arith.constant 1 : index
    %c0_116 = arith.constant 0 : index
    %181 = vector.load %arg8[%c1_115, %c0_116] : memref<8x128xf32, #tpu.memory_space<vmem>>, vector<1x128xf32>
    tpu.vector_store %arg8[%c1_115, %c0_116], %180 {strides = array<i32>} : memref<8x128xf32, #tpu.memory_space<vmem>>, vector<1x128xf32>,
    %c4_i32_117 = arith.constant 4 : i32
    %182 = arith.muli %167, %c4_i32_117 : i32
    %c2_i32_118 = arith.constant 2 : i32
    %183 = arith.addi %182, %c2_i32_118 : i32
    %184 = arith.index_cast %183 : i32 to index
    %185 = memref.load %arg1[%184] : memref<32xi32, #tpu.memory_space<smem>>
    %186 = arith.index_cast %185 : i32 to index
    %c0_119 = arith.constant 0 : index
    %187 = vector.load %arg3[%186, %c0_119] : memref<128x128xf32, #tpu.memory_space<vmem>>, vector<1x128xf32>
    %c2_120 = arith.constant 2 : index
    %c0_121 = arith.constant 0 : index
    %188 = vector.load %arg8[%c2_120, %c0_121] : memref<8x128xf32, #tpu.memory_space<vmem>>, vector<1x128xf32>
    tpu.vector_store %arg8[%c2_120, %c0_121], %187 {strides = array<i32>} : memref<8x128xf32, #tpu.memory_space<vmem>>, vector<1x128xf32>,
    %c4_i32_122 = arith.constant 4 : i32
    %189 = arith.muli %167, %c4_i32_122 : i32
    %c3_i32_123 = arith.constant 3 : i32
    %190 = arith.addi %189, %c3_i32_123 : i32
    %191 = arith.index_cast %190 : i32 to index
    %192 = memref.load %arg1[%191] : memref<32xi32, #tpu.memory_space<smem>>
    %193 = arith.index_cast %192 : i32 to index
    %c0_124 = arith.constant 0 : index
    %194 = vector.load %arg3[%193, %c0_124] : memref<128x128xf32, #tpu.memory_space<vmem>>, vector<1x128xf32>
    %c3_125 = arith.constant 3 : index
    %c0_126 = arith.constant 0 : index
    %195 = vector.load %arg8[%c3_125, %c0_126] : memref<8x128xf32, #tpu.memory_space<vmem>>, vector<1x128xf32>
    tpu.vector_store %arg8[%c3_125, %c0_126], %194 {strides = array<i32>} : memref<8x128xf32, #tpu.memory_space<vmem>>, vector<1x128xf32>,
    %c0_127 = arith.constant 0 : index
    %c0_128 = arith.constant 0 : index
    %196 = vector.load %arg8[%c0_127, %c0_128] : memref<8x128xf32, #tpu.memory_space<vmem>>, vector<8x128xf32>
    %197 = vector.broadcast %4 : vector<1x128xf32> to vector<8x128xf32>
    %198 = arith.addf %196, %197 : vector<8x128xf32>
    %cst_129 = arith.constant dense<0.000000e+00> : vector<8x128xf32>
    %199 = tpu.matmul %161, %3, %cst_129 {dimension_numbers = #tpu.dot_dimension_numbers<[1], [0], [0], [1], [0, 0, 1, 1], [], []>} : vector<8x128xf32>, vector<128x128xf32>, vector<8x128xf32> -> vector<8x128xf32>
    %200 = arith.addf %198, %199 : vector<8x128xf32>
    %201 = math.tanh %200 : vector<8x128xf32>
    %202 = arith.index_cast %c4_i32_105 : i32 to index
    %c0_130 = arith.constant 0 : index
    %c0_131 = arith.constant 0 : index
    %203 = vector.load %arg6[%202, %c0_130, %c0_131] : memref<8x8x128xf32, #tpu.memory_space<vmem>>, vector<1x8x128xf32>
    %204 = vector.shape_cast %203 : vector<1x8x128xf32> to vector<8x128xf32>
    %205 = vector.shape_cast %201 : vector<8x128xf32> to vector<1x8x128xf32>
    tpu.vector_store %arg6[%202, %c0_130, %c0_131], %205 {strides = array<i32>} : memref<8x8x128xf32, #tpu.memory_space<vmem>>, vector<1x8x128xf32>,
    %c5_i32 = arith.constant 5 : i32
    %c8_i32_132 = arith.constant 8 : i32
    %206 = arith.muli %arg0, %c8_i32_132 : i32
    %207 = arith.addi %206, %c5_i32 : i32
    %c4_i32_133 = arith.constant 4 : i32
    %208 = arith.muli %207, %c4_i32_133 : i32
    %c0_i32_134 = arith.constant 0 : i32
    %209 = arith.addi %208, %c0_i32_134 : i32
    %210 = arith.index_cast %209 : i32 to index
    %211 = memref.load %arg1[%210] : memref<32xi32, #tpu.memory_space<smem>>
    %212 = arith.index_cast %211 : i32 to index
    %c0_135 = arith.constant 0 : index
    %213 = vector.load %arg3[%212, %c0_135] : memref<128x128xf32, #tpu.memory_space<vmem>>, vector<1x128xf32>
    %c0_136 = arith.constant 0 : index
    %c0_137 = arith.constant 0 : index
    %214 = vector.load %arg8[%c0_136, %c0_137] : memref<8x128xf32, #tpu.memory_space<vmem>>, vector<1x128xf32>
    tpu.vector_store %arg8[%c0_136, %c0_137], %213 {strides = array<i32>} : memref<8x128xf32, #tpu.memory_space<vmem>>, vector<1x128xf32>,
    %c4_i32_138 = arith.constant 4 : i32
    %215 = arith.muli %207, %c4_i32_138 : i32
    %c1_i32_139 = arith.constant 1 : i32
    %216 = arith.addi %215, %c1_i32_139 : i32
    %217 = arith.index_cast %216 : i32 to index
    %218 = memref.load %arg1[%217] : memref<32xi32, #tpu.memory_space<smem>>
    %219 = arith.index_cast %218 : i32 to index
    %c0_140 = arith.constant 0 : index
    %220 = vector.load %arg3[%219, %c0_140] : memref<128x128xf32, #tpu.memory_space<vmem>>, vector<1x128xf32>
    %c1_141 = arith.constant 1 : index
    %c0_142 = arith.constant 0 : index
    %221 = vector.load %arg8[%c1_141, %c0_142] : memref<8x128xf32, #tpu.memory_space<vmem>>, vector<1x128xf32>
    tpu.vector_store %arg8[%c1_141, %c0_142], %220 {strides = array<i32>} : memref<8x128xf32, #tpu.memory_space<vmem>>, vector<1x128xf32>,
    %c4_i32_143 = arith.constant 4 : i32
    %222 = arith.muli %207, %c4_i32_143 : i32
    %c2_i32_144 = arith.constant 2 : i32
    %223 = arith.addi %222, %c2_i32_144 : i32
    %224 = arith.index_cast %223 : i32 to index
    %225 = memref.load %arg1[%224] : memref<32xi32, #tpu.memory_space<smem>>
    %226 = arith.index_cast %225 : i32 to index
    %c0_145 = arith.constant 0 : index
    %227 = vector.load %arg3[%226, %c0_145] : memref<128x128xf32, #tpu.memory_space<vmem>>, vector<1x128xf32>
    %c2_146 = arith.constant 2 : index
    %c0_147 = arith.constant 0 : index
    %228 = vector.load %arg8[%c2_146, %c0_147] : memref<8x128xf32, #tpu.memory_space<vmem>>, vector<1x128xf32>
    tpu.vector_store %arg8[%c2_146, %c0_147], %227 {strides = array<i32>} : memref<8x128xf32, #tpu.memory_space<vmem>>, vector<1x128xf32>,
    %c4_i32_148 = arith.constant 4 : i32
    %229 = arith.muli %207, %c4_i32_148 : i32
    %c3_i32_149 = arith.constant 3 : i32
    %230 = arith.addi %229, %c3_i32_149 : i32
    %231 = arith.index_cast %230 : i32 to index
    %232 = memref.load %arg1[%231] : memref<32xi32, #tpu.memory_space<smem>>
    %233 = arith.index_cast %232 : i32 to index
    %c0_150 = arith.constant 0 : index
    %234 = vector.load %arg3[%233, %c0_150] : memref<128x128xf32, #tpu.memory_space<vmem>>, vector<1x128xf32>
    %c3_151 = arith.constant 3 : index
    %c0_152 = arith.constant 0 : index
    %235 = vector.load %arg8[%c3_151, %c0_152] : memref<8x128xf32, #tpu.memory_space<vmem>>, vector<1x128xf32>
    tpu.vector_store %arg8[%c3_151, %c0_152], %234 {strides = array<i32>} : memref<8x128xf32, #tpu.memory_space<vmem>>, vector<1x128xf32>,
    %c0_153 = arith.constant 0 : index
    %c0_154 = arith.constant 0 : index
    %236 = vector.load %arg8[%c0_153, %c0_154] : memref<8x128xf32, #tpu.memory_space<vmem>>, vector<8x128xf32>
    %237 = vector.broadcast %4 : vector<1x128xf32> to vector<8x128xf32>
    %238 = arith.addf %236, %237 : vector<8x128xf32>
    %cst_155 = arith.constant dense<0.000000e+00> : vector<8x128xf32>
    %239 = tpu.matmul %201, %3, %cst_155 {dimension_numbers = #tpu.dot_dimension_numbers<[1], [0], [0], [1], [0, 0, 1, 1], [], []>} : vector<8x128xf32>, vector<128x128xf32>, vector<8x128xf32> -> vector<8x128xf32>
    %240 = arith.addf %238, %239 : vector<8x128xf32>
    %241 = math.tanh %240 : vector<8x128xf32>
    %242 = arith.index_cast %c5_i32 : i32 to index
    %c0_156 = arith.constant 0 : index
    %c0_157 = arith.constant 0 : index
    %243 = vector.load %arg6[%242, %c0_156, %c0_157] : memref<8x8x128xf32, #tpu.memory_space<vmem>>, vector<1x8x128xf32>
    %244 = vector.shape_cast %243 : vector<1x8x128xf32> to vector<8x128xf32>
    %245 = vector.shape_cast %241 : vector<8x128xf32> to vector<1x8x128xf32>
    tpu.vector_store %arg6[%242, %c0_156, %c0_157], %245 {strides = array<i32>} : memref<8x8x128xf32, #tpu.memory_space<vmem>>, vector<1x8x128xf32>,
    %c6_i32 = arith.constant 6 : i32
    %c8_i32_158 = arith.constant 8 : i32
    %246 = arith.muli %arg0, %c8_i32_158 : i32
    %247 = arith.addi %246, %c6_i32 : i32
    %c4_i32_159 = arith.constant 4 : i32
    %248 = arith.muli %247, %c4_i32_159 : i32
    %c0_i32_160 = arith.constant 0 : i32
    %249 = arith.addi %248, %c0_i32_160 : i32
    %250 = arith.index_cast %249 : i32 to index
    %251 = memref.load %arg1[%250] : memref<32xi32, #tpu.memory_space<smem>>
    %252 = arith.index_cast %251 : i32 to index
    %c0_161 = arith.constant 0 : index
    %253 = vector.load %arg3[%252, %c0_161] : memref<128x128xf32, #tpu.memory_space<vmem>>, vector<1x128xf32>
    %c0_162 = arith.constant 0 : index
    %c0_163 = arith.constant 0 : index
    %254 = vector.load %arg8[%c0_162, %c0_163] : memref<8x128xf32, #tpu.memory_space<vmem>>, vector<1x128xf32>
    tpu.vector_store %arg8[%c0_162, %c0_163], %253 {strides = array<i32>} : memref<8x128xf32, #tpu.memory_space<vmem>>, vector<1x128xf32>,
    %c4_i32_164 = arith.constant 4 : i32
    %255 = arith.muli %247, %c4_i32_164 : i32
    %c1_i32_165 = arith.constant 1 : i32
    %256 = arith.addi %255, %c1_i32_165 : i32
    %257 = arith.index_cast %256 : i32 to index
    %258 = memref.load %arg1[%257] : memref<32xi32, #tpu.memory_space<smem>>
    %259 = arith.index_cast %258 : i32 to index
    %c0_166 = arith.constant 0 : index
    %260 = vector.load %arg3[%259, %c0_166] : memref<128x128xf32, #tpu.memory_space<vmem>>, vector<1x128xf32>
    %c1_167 = arith.constant 1 : index
    %c0_168 = arith.constant 0 : index
    %261 = vector.load %arg8[%c1_167, %c0_168] : memref<8x128xf32, #tpu.memory_space<vmem>>, vector<1x128xf32>
    tpu.vector_store %arg8[%c1_167, %c0_168], %260 {strides = array<i32>} : memref<8x128xf32, #tpu.memory_space<vmem>>, vector<1x128xf32>,
    %c4_i32_169 = arith.constant 4 : i32
    %262 = arith.muli %247, %c4_i32_169 : i32
    %c2_i32_170 = arith.constant 2 : i32
    %263 = arith.addi %262, %c2_i32_170 : i32
    %264 = arith.index_cast %263 : i32 to index
    %265 = memref.load %arg1[%264] : memref<32xi32, #tpu.memory_space<smem>>
    %266 = arith.index_cast %265 : i32 to index
    %c0_171 = arith.constant 0 : index
    %267 = vector.load %arg3[%266, %c0_171] : memref<128x128xf32, #tpu.memory_space<vmem>>, vector<1x128xf32>
    %c2_172 = arith.constant 2 : index
    %c0_173 = arith.constant 0 : index
    %268 = vector.load %arg8[%c2_172, %c0_173] : memref<8x128xf32, #tpu.memory_space<vmem>>, vector<1x128xf32>
    tpu.vector_store %arg8[%c2_172, %c0_173], %267 {strides = array<i32>} : memref<8x128xf32, #tpu.memory_space<vmem>>, vector<1x128xf32>,
    %c4_i32_174 = arith.constant 4 : i32
    %269 = arith.muli %247, %c4_i32_174 : i32
    %c3_i32_175 = arith.constant 3 : i32
    %270 = arith.addi %269, %c3_i32_175 : i32
    %271 = arith.index_cast %270 : i32 to index
    %272 = memref.load %arg1[%271] : memref<32xi32, #tpu.memory_space<smem>>
    %273 = arith.index_cast %272 : i32 to index
    %c0_176 = arith.constant 0 : index
    %274 = vector.load %arg3[%273, %c0_176] : memref<128x128xf32, #tpu.memory_space<vmem>>, vector<1x128xf32>
    %c3_177 = arith.constant 3 : index
    %c0_178 = arith.constant 0 : index
    %275 = vector.load %arg8[%c3_177, %c0_178] : memref<8x128xf32, #tpu.memory_space<vmem>>, vector<1x128xf32>
    tpu.vector_store %arg8[%c3_177, %c0_178], %274 {strides = array<i32>} : memref<8x128xf32, #tpu.memory_space<vmem>>, vector<1x128xf32>,
    %c0_179 = arith.constant 0 : index
    %c0_180 = arith.constant 0 : index
    %276 = vector.load %arg8[%c0_179, %c0_180] : memref<8x128xf32, #tpu.memory_space<vmem>>, vector<8x128xf32>
    %277 = vector.broadcast %4 : vector<1x128xf32> to vector<8x128xf32>
    %278 = arith.addf %276, %277 : vector<8x128xf32>
    %cst_181 = arith.constant dense<0.000000e+00> : vector<8x128xf32>
    %279 = tpu.matmul %241, %3, %cst_181 {dimension_numbers = #tpu.dot_dimension_numbers<[1], [0], [0], [1], [0, 0, 1, 1], [], []>} : vector<8x128xf32>, vector<128x128xf32>, vector<8x128xf32> -> vector<8x128xf32>
    %280 = arith.addf %278, %279 : vector<8x128xf32>
    %281 = math.tanh %280 : vector<8x128xf32>
    %282 = arith.index_cast %c6_i32 : i32 to index
    %c0_182 = arith.constant 0 : index
    %c0_183 = arith.constant 0 : index
    %283 = vector.load %arg6[%282, %c0_182, %c0_183] : memref<8x8x128xf32, #tpu.memory_space<vmem>>, vector<1x8x128xf32>
    %284 = vector.shape_cast %283 : vector<1x8x128xf32> to vector<8x128xf32>
    %285 = vector.shape_cast %281 : vector<8x128xf32> to vector<1x8x128xf32>
    tpu.vector_store %arg6[%282, %c0_182, %c0_183], %285 {strides = array<i32>} : memref<8x8x128xf32, #tpu.memory_space<vmem>>, vector<1x8x128xf32>,
    %c7_i32 = arith.constant 7 : i32
    %c8_i32_184 = arith.constant 8 : i32
    %286 = arith.muli %arg0, %c8_i32_184 : i32
    %287 = arith.addi %286, %c7_i32 : i32
    %c4_i32_185 = arith.constant 4 : i32
    %288 = arith.muli %287, %c4_i32_185 : i32
    %c0_i32_186 = arith.constant 0 : i32
    %289 = arith.addi %288, %c0_i32_186 : i32
    %290 = arith.index_cast %289 : i32 to index
    %291 = memref.load %arg1[%290] : memref<32xi32, #tpu.memory_space<smem>>
    %292 = arith.index_cast %291 : i32 to index
    %c0_187 = arith.constant 0 : index
    %293 = vector.load %arg3[%292, %c0_187] : memref<128x128xf32, #tpu.memory_space<vmem>>, vector<1x128xf32>
    %c0_188 = arith.constant 0 : index
    %c0_189 = arith.constant 0 : index
    %294 = vector.load %arg8[%c0_188, %c0_189] : memref<8x128xf32, #tpu.memory_space<vmem>>, vector<1x128xf32>
    tpu.vector_store %arg8[%c0_188, %c0_189], %293 {strides = array<i32>} : memref<8x128xf32, #tpu.memory_space<vmem>>, vector<1x128xf32>,
    %c4_i32_190 = arith.constant 4 : i32
    %295 = arith.muli %287, %c4_i32_190 : i32
    %c1_i32_191 = arith.constant 1 : i32
    %296 = arith.addi %295, %c1_i32_191 : i32
    %297 = arith.index_cast %296 : i32 to index
    %298 = memref.load %arg1[%297] : memref<32xi32, #tpu.memory_space<smem>>
    %299 = arith.index_cast %298 : i32 to index
    %c0_192 = arith.constant 0 : index
    %300 = vector.load %arg3[%299, %c0_192] : memref<128x128xf32, #tpu.memory_space<vmem>>, vector<1x128xf32>
    %c1_193 = arith.constant 1 : index
    %c0_194 = arith.constant 0 : index
    %301 = vector.load %arg8[%c1_193, %c0_194] : memref<8x128xf32, #tpu.memory_space<vmem>>, vector<1x128xf32>
    tpu.vector_store %arg8[%c1_193, %c0_194], %300 {strides = array<i32>} : memref<8x128xf32, #tpu.memory_space<vmem>>, vector<1x128xf32>,
    %c4_i32_195 = arith.constant 4 : i32
    %302 = arith.muli %287, %c4_i32_195 : i32
    %c2_i32_196 = arith.constant 2 : i32
    %303 = arith.addi %302, %c2_i32_196 : i32
    %304 = arith.index_cast %303 : i32 to index
    %305 = memref.load %arg1[%304] : memref<32xi32, #tpu.memory_space<smem>>
    %306 = arith.index_cast %305 : i32 to index
    %c0_197 = arith.constant 0 : index
    %307 = vector.load %arg3[%306, %c0_197] : memref<128x128xf32, #tpu.memory_space<vmem>>, vector<1x128xf32>
    %c2_198 = arith.constant 2 : index
    %c0_199 = arith.constant 0 : index
    %308 = vector.load %arg8[%c2_198, %c0_199] : memref<8x128xf32, #tpu.memory_space<vmem>>, vector<1x128xf32>
    tpu.vector_store %arg8[%c2_198, %c0_199], %307 {strides = array<i32>} : memref<8x128xf32, #tpu.memory_space<vmem>>, vector<1x128xf32>,
    %c4_i32_200 = arith.constant 4 : i32
    %309 = arith.muli %287, %c4_i32_200 : i32
    %c3_i32_201 = arith.constant 3 : i32
    %310 = arith.addi %309, %c3_i32_201 : i32
    %311 = arith.index_cast %310 : i32 to index
    %312 = memref.load %arg1[%311] : memref<32xi32, #tpu.memory_space<smem>>
    %313 = arith.index_cast %312 : i32 to index
    %c0_202 = arith.constant 0 : index
    %314 = vector.load %arg3[%313, %c0_202] : memref<128x128xf32, #tpu.memory_space<vmem>>, vector<1x128xf32>
    %c3_203 = arith.constant 3 : index
    %c0_204 = arith.constant 0 : index
    %315 = vector.load %arg8[%c3_203, %c0_204] : memref<8x128xf32, #tpu.memory_space<vmem>>, vector<1x128xf32>
    tpu.vector_store %arg8[%c3_203, %c0_204], %314 {strides = array<i32>} : memref<8x128xf32, #tpu.memory_space<vmem>>, vector<1x128xf32>,
    %c0_205 = arith.constant 0 : index
    %c0_206 = arith.constant 0 : index
    %316 = vector.load %arg8[%c0_205, %c0_206] : memref<8x128xf32, #tpu.memory_space<vmem>>, vector<8x128xf32>
    %317 = vector.broadcast %4 : vector<1x128xf32> to vector<8x128xf32>
    %318 = arith.addf %316, %317 : vector<8x128xf32>
    %cst_207 = arith.constant dense<0.000000e+00> : vector<8x128xf32>
    %319 = tpu.matmul %281, %3, %cst_207 {dimension_numbers = #tpu.dot_dimension_numbers<[1], [0], [0], [1], [0, 0, 1, 1], [], []>} : vector<8x128xf32>, vector<128x128xf32>, vector<8x128xf32> -> vector<8x128xf32>
    %320 = arith.addf %318, %319 : vector<8x128xf32>
    %321 = math.tanh %320 : vector<8x128xf32>
    %322 = arith.index_cast %c7_i32 : i32 to index
    %c0_208 = arith.constant 0 : index
    %c0_209 = arith.constant 0 : index
    %323 = vector.load %arg6[%322, %c0_208, %c0_209] : memref<8x8x128xf32, #tpu.memory_space<vmem>>, vector<1x8x128xf32>
    %324 = vector.shape_cast %323 : vector<1x8x128xf32> to vector<8x128xf32>
    %325 = vector.shape_cast %321 : vector<8x128xf32> to vector<1x8x128xf32>
    tpu.vector_store %arg6[%322, %c0_208, %c0_209], %325 {strides = array<i32>} : memref<8x8x128xf32, #tpu.memory_space<vmem>>, vector<1x8x128xf32>,
    %c8_i32_210 = arith.constant 8 : i32
    %c0_211 = arith.constant 0 : index
    %c0_212 = arith.constant 0 : index
    %326 = vector.load %arg7[%c0_211, %c0_212] : memref<8x128xf32, #tpu.memory_space<vmem>>, vector<8x128xf32>
    tpu.vector_store %arg7[%c0_211, %c0_212], %321 {strides = array<i32>} : memref<8x128xf32, #tpu.memory_space<vmem>>, vector<8x128xf32>,
    return
  }
  func.func @transform_0(%arg0: i32, %arg1: memref<32xi32, #tpu.memory_space<smem>>) -> (i32, i32) {
    %c0_i32 = arith.constant 0 : i32
    %c0_i32_0 = arith.constant 0 : i32
    %c0_i32_1 = arith.constant 0 : i32
    return %c0_i32, %c0_i32_0 : i32, i32
  }
  func.func @transform_1(%arg0: i32, %arg1: memref<32xi32, #tpu.memory_space<smem>>) -> (i32, i32) {
    %c0_i32 = arith.constant 0 : i32
    %c0_i32_0 = arith.constant 0 : i32
    %c0_i32_1 = arith.constant 0 : i32
    return %c0_i32, %c0_i32_0 : i32, i32
  }
  func.func @transform_2(%arg0: i32, %arg1: memref<32xi32, #tpu.memory_space<smem>>) -> (i32, i32) {
    %c0_i32 = arith.constant 0 : i32
    %c0_i32_0 = arith.constant 0 : i32
    %c0_i32_1 = arith.constant 0 : i32
    return %c0_i32, %c0_i32_0 : i32, i32
  }
  func.func @transform_3(%arg0: i32, %arg1: memref<32xi32, #tpu.memory_space<smem>>) -> (i32, i32) {
    %c0_i32 = arith.constant 0 : i32
    %c0_i32_0 = arith.constant 0 : i32
    %c0_i32_1 = arith.constant 0 : i32
    return %c0_i32, %c0_i32_0 : i32, i32
  }
  func.func @transform_4(%arg0: i32, %arg1: memref<32xi32, #tpu.memory_space<smem>>) -> (i32, i32, i32) {
    %c0_i32 = arith.constant 0 : i32
    %c0_i32_0 = arith.constant 0 : i32
    %c0_i32_1 = arith.constant 0 : i32
    return %arg0, %c0_i32, %c0_i32_0 : i32, i32, i32
  }
}

</mosaic_0001>

<bundles_post_ra>
// kernel: tpu_custom_call.1
= control target key start
LH: loop header
LB: loop body
LE: loop exit
PB: predicated region body
PF: predicated region fallthrough
CT: control target
= control target key end

     0   :  { %s1488_s18 = smov [#allocation5]   ;;  %s1872_s0 = inlined_call_operand.hbm [shape: s32[32], index: 0, kind: input, shape index: {}]   ;;  %s1873_s1 = inlined_call_operand.hbm [shape: f32[8,128], index: 1, kind: input, shape index: {}]   ;;  %s1874_s2 = inlined_call_operand.hbm [shape: f32[128,128], index: 2, kind: input, shape index: {}]   ;;  %s1875_s3 = inlined_call_operand.hbm [shape: f32[128,128], index: 3, kind: input, shape index: {}]   ;;  %s1876_s4 = inlined_call_operand.vmem [shape: f32[1,128], index: 4, kind: input, shape index: {}]   ;;  %s1877_s5 = inlined_call_operand.hbm [shape: f32[8,8,128], index: 5, kind: output, shape index: {}]  }
   0x1   :  { %11 = dma.hbm_to_smem %s1872_s0, 16, %s1488_s18, [#allocation4] }
   0x2   :  { %1480 = dma.done.wait [#allocation4], 16 }
   0x3   :  { %1481 = vsyncadd [#allocation4], 4294967280 }
   0x4   :  { %13 = sfence }
   0x5   :  { %14 = vsyncpa [#allocation7], 0 }
   0x6   :  { %15 = vsyncpa [#allocation10], 0 }
   0x7   :  { %16 = vsyncpa [#allocation8], 0  ;;  %s1489_s21 = smov [#allocation9]  }
   0x8   :  { %s32_s22 = sshll.u32 %s1489_s21, 4  ;;  %s33_s22 = int_to_ptr.vmem [resolvable:$true] %s32_s22 }
   0x9   :  { %s1408_s23 = scalar_lea.vmem %s33_s22, 2048  ;;  %p1413_p1 = scmp.lt.s32.totalorder %s33_s22, %s33_s22 }
   0xa   :  { %p1409_p0 = scmp.ne.s32.totalorder %s33_s22, %s1408_s23  ;;  %p1414_p2 = scmp.lt.s32.totalorder %s1408_s23, %s1408_s23 }
   0xc   :  { %p1415_p3 = por %p1414_p2, %p1413_p1 }
   0xe   :  { %p1416_p4 = pnand %p1415_p3, %p1409_p0 }
  0x10   :  { %1419 = shalt.err (!%p1416_p4)
}
  0x11   :  { %s1490_s24 = smov 128   ;;  %s1491_s25 = smov 8  }
  0x12   :  { %38 = dma.hbm_to_vmem [thread:$0]  %s1874_s2, 2048, %s33_s22, [#allocation10], %s1490_s24, %s1490_s24, %s1491_s25  }
  0x13   :  { %s1492_s27 = smov [#allocation6]   ;;  %s1493_s29 = smov [#allocation11]  }
  0x14   :  { %s23_s28 = sshll.u32 %s1492_s27, 4  ;;  %s44_s30 = sshll.u32 %s1493_s29, 4  ;;  %s24_s28 = int_to_ptr.vmem [resolvable:$true] %s23_s28  ;;  %s45_s30 = int_to_ptr.vmem [resolvable:$true] %s44_s30 }
  0x15   :  { %s1428_s6 = scalar_lea.vmem %s24_s28, 128  ;;  %p1433_p6 = scmp.lt.s32.totalorder %s24_s28, %s24_s28 }
  0x16   :  { %p1429_p5 = scmp.ne.s32.totalorder %s24_s28, %s1428_s6  ;;  %p1434_p7 = scmp.lt.s32.totalorder %s1428_s6, %s1428_s6 }
  0x18   :  { %p1435_p8 = por %p1434_p7, %p1433_p6 }
  0x1a   :  { %p1436_p9 = pnand %p1435_p8, %p1429_p5 }
  0x1c   :  { %1439 = shalt.err (!%p1436_p9)
}
  0x1d   :  { %26 = dma.hbm_to_vmem [thread:$0]  %s1873_s1, 128, %s24_s28, [#allocation7]  }
  0x1e   :  { %s1448_s9 = scalar_lea.vmem %s45_s30, 2048  ;;  %p1453_p11 = scmp.lt.s32.totalorder %s45_s30, %s45_s30 }
  0x1f   :  { %p1449_p10 = scmp.ne.s32.totalorder %s45_s30, %s1448_s9  ;;  %p1454_p12 = scmp.lt.s32.totalorder %s1448_s9, %s1448_s9 }
  0x21   :  { %p1455_p13 = por %p1454_p12, %p1453_p11 }
  0x23   :  { %p1456_p0 = pnand %p1455_p13, %p1449_p10 }
  0x25   :  { %1459 = shalt.err (!%p1456_p0)
}
  0x26   :  { %50 = dma.hbm_to_vmem [thread:$0]  %s1875_s3, 2048, %s45_s30, [#allocation10], %s1490_s24, %s1490_s24, %s1491_s25  }
  0x27   :  { %1482 = dma.done.wait [#allocation7], 128  }
  0x28   :  { %1483 = vsyncadd [#allocation7], 4294967168 }
  0x29   :  { %1484 = dma.done.wait [#allocation10], 4096  }
  0x2a   :  { %1485 = vsyncadd [#allocation10], 4294963200  ;;  %v1494_v0 = vmov 0.0   ;;  %vm1495_vm0 = vmmov 0   ;;  %s88_s1 = sld [smem:[#allocation5]]  ;;  %v1554_v1 = vld [vmem:[#allocation11 + $0x78] sm:$0xff] }
  0x2b   :  { %1087 = vmatprep.subr.mxu0 %v1494_v0  ;;  %68 = vst [vmem:[#allocation3] sm:$0xff] %v1494_v0  ;;  %1119 = vmatprep.mubr.msk.f32.mxu0 %vm1495_vm0, %v1494_v0  ;;  %s919_s11 = sld [smem:[#allocation5 + $0x1]]  ;;  %v1556_v2 = vld [vmem:[#allocation11 + $0x70] sm:$0xff]  ;;  %v1561_v3 = vld [vmem:[#allocation11 + $0x68] sm:$0xff]  ;;  %v1567_v4 = vld [vmem:[#allocation11 + $0x60] sm:$0xff] }
  0x2c   :  { %1122 = vmatprep.subr.mxu1 %v1494_v0  ;;  %1154 = vmatprep.mubr.msk.f32.mxu1 %vm1495_vm0, %v1494_v0  ;;  %s920_s3 = sld [smem:[#allocation5 + $0x2]]  ;;  %v1571_v5 = vld [vmem:[#allocation11 + $0x58] sm:$0xff]  ;;  %v1580_v10 = vld [vmem:[#allocation11 + $0x50] sm:$0xff]  ;;  %v1586_v11 = vld [vmem:[#allocation11 + $0x48] sm:$0xff] }
  0x2d   :  { %s1552_s12 = sld [smem:[#allocation5 + $0x3]]  ;;  %1088 = vmatpush3.msra.mxu0 %v1554_v1  ;;  %1123 = vmatpush3.msra.mxu1 %v1554_v1  ;;  %v1592_v12 = vld [vmem:[#allocation11 + $0x40] sm:$0xff]  ;;  %v1598_v13 = vld [vmem:[#allocation11 + $0x38] sm:$0xff]  ;;  %v1604_v14 = vld [vmem:[#allocation11 + $0x30] sm:$0xff] }
  0x2e   :  { %1089 = vmatprep.subr.mxu0 %v1494_v0  ;;  %1124 = vmatprep.subr.mxu1 %v1494_v0  ;;  %v1610_v15 = vld [vmem:[#allocation11 + $0x28] sm:$0xff]  ;;  %v1616_v16 = vld [vmem:[#allocation11 + $0x20] sm:$0xff]  ;;  %v1622_v17 = vld [vmem:[#allocation11 + $0x18] sm:$0xff]  ;;  %s923_s17 = sld [smem:[#allocation5 + $0x4]] }
  0x2f   :  { %1090 = vmatpush3.msra.mxu0 %v1556_v2  ;;  %1125 = vmatpush3.msra.mxu1 %v1556_v2  ;;  %v1628_v18 = vld [vmem:[#allocation11 + $0x10] sm:$0xff]  ;;  %v1634_v19 = vld [vmem:[#allocation11 + $0x8] sm:$0xff]  ;;  %v1640_v20 = vld [vmem:[#allocation11] sm:$0xff]  ;;  %s924_s18 = sld [smem:[#allocation5 + $0x5]] }
  0x30   :  { %1091 = vmatprep.subr.mxu0 %v1494_v0  ;;  %1126 = vmatprep.subr.mxu1 %v1494_v0  ;;  %s89_s13 = scalar_lea.vmem [#allocation9], %s88_s1  ;;  %v66_v21 = vld [vmem:[#allocation6] sm:$0xff]  ;;  %s925_s19 = sld [smem:[#allocation5 + $0x6]]  ;;  %v1688_v27 = vld [vmem:[%s1876_s4] ss:$0 sm:$0xff] }
  0x31   :  { %1092 = vmatpush3.msra.mxu0 %v1561_v3  ;;  %1127 = vmatpush3.msra.mxu1 %v1561_v3  ;;  %v90_v6 = vld [vmem:[%s89_s13] sm:$0x1]  ;;  %s94_s14 = scalar_lea.vmem [#allocation9], %s919_s11  ;;  %s926_s20 = sld [smem:[#allocation5 + $0x7]] }
  0x32   :  { %1093 = vmatprep.subr.mxu0 %v1494_v0  ;;  %1128 = vmatprep.subr.mxu1 %v1494_v0  ;;  %v95_v7 = vld [vmem:[%s94_s14] sm:$0x1]  ;;  %s99_s15 = scalar_lea.vmem [#allocation9], %s920_s3  ;;  %91 = vst [vmem:[#allocation3] sm:$0x1] %v90_v6  ;;  %s927_s4 = sld [smem:[#allocation5 + $0x8]] }
  0x33   :  { %v100_v8 = vld [vmem:[%s99_s15] sm:$0x1]  ;;  %1094 = vmatpush3.msra.mxu0 %v1567_v4  ;;  %1129 = vmatpush3.msra.mxu1 %v1567_v4  ;;  %96 = vst [vmem:[#allocation3 + $0x1] sm:$0x1] %v95_v7  ;;  %s104_s16 = scalar_lea.vmem [#allocation9], %s1552_s12  ;;  %s928_s28 = sld [smem:[#allocation5 + $0x9]] }
  0x34   :  { %101 = vst [vmem:[#allocation3 + $0x2] sm:$0x1] %v100_v8  ;;  %v105_v9 = vld [vmem:[%s104_s16] sm:$0x1]  ;;  %1095 = vmatprep.subr.mxu0 %v1494_v0  ;;  %1130 = vmatprep.subr.mxu1 %v1494_v0  ;;  %s192_s21 = scalar_lea.vmem [#allocation9], %s923_s17  ;;  %s929_s29 = sld [smem:[#allocation5 + $0xa]] }
  0x35   :  { %106 = vst [vmem:[#allocation3 + $0x3] sm:$0x1] %v105_v9  ;;  %1096 = vmatpush3.msra.mxu0 %v1571_v5  ;;  %1131 = vmatpush3.msra.mxu1 %v1571_v5  ;;  %v193_v23 = vld [vmem:[%s192_s21] sm:$0x1]  ;;  %s197_s22 = scalar_lea.vmem [#allocation9], %s924_s18  ;;  %s930_s30 = sld [smem:[#allocation5 + $0xb]] }
  0x36   :  { %1097 = vmatprep.subr.mxu0 %v1494_v0  ;;  %1132 = vmatprep.subr.mxu1 %v1494_v0  ;;  %v198_v24 = vld [vmem:[%s197_s22] sm:$0x1]  ;;  %s202_s23 = scalar_lea.vmem [#allocation9], %s925_s19  ;;  %s931_s2 = sld [smem:[#allocation5 + $0xc]] }
  0x37   :  { %1098 = vmatpush3.msra.mxu0 %v1580_v10  ;;  %1133 = vmatpush3.msra.mxu1 %v1580_v10  ;;  %v203_v25 = vld [vmem:[%s202_s23] sm:$0x1]  ;;  %s207_s0 = scalar_lea.vmem [#allocation9], %s926_s20  ;;  %s932_s10 = sld [smem:[#allocation5 + $0xd]] }
  0x38   :  { %1099 = vmatprep.subr.mxu0 %v1494_v0  ;;  %1134 = vmatprep.subr.mxu1 %v1494_v0  ;;  %v208_v26 = vld [vmem:[%s207_s0] sm:$0x1]  ;;  %s289_s6 = scalar_lea.vmem [#allocation9], %s927_s4  ;;  %s933_s1 = sld [smem:[#allocation5 + $0xe]] }
  0x39   :  { %1100 = vmatpush3.msra.mxu0 %v1586_v11  ;;  %1135 = vmatpush3.msra.mxu1 %v1586_v11  ;;  %v290_v34 = vld [vmem:[%s289_s6] sm:$0x1]  ;;  %s294_s7 = scalar_lea.vmem [#allocation9], %s928_s28  ;;  %s934_s11 = sld [smem:[#allocation5 + $0xf]] }
  0x3a   :  { %1101 = vmatprep.subr.mxu0 %v1494_v0  ;;  %1136 = vmatprep.subr.mxu1 %v1494_v0  ;;  %v295_v35 = vld [vmem:[%s294_s7] sm:$0x1]  ;;  %s299_s8 = scalar_lea.vmem [#allocation9], %s929_s29  ;;  %s935_s15 = sld [smem:[#allocation5 + $0x10]] }
  0x3b   :  { %1102 = vmatpush3.msra.mxu0 %v1592_v12  ;;  %1137 = vmatpush3.msra.mxu1 %v1592_v12  ;;  %v300_v36 = vld [vmem:[%s299_s8] sm:$0x1]  ;;  %s304_s9 = scalar_lea.vmem [#allocation9], %s930_s30  ;;  %s936_s16 = sld [smem:[#allocation5 + $0x11]] }
  0x3c   :  { %1103 = vmatprep.subr.mxu0 %v1494_v0  ;;  %1138 = vmatprep.subr.mxu1 %v1494_v0  ;;  %v107_v22 = vld [vmem:[#allocation3] sm:$0xff]  ;;  %s386_s3 = scalar_lea.vmem [#allocation9], %s931_s2  ;;  %s937_s17 = sld [smem:[#allocation5 + $0x12]] }
  0x3d   :  { %1104 = vmatpush3.msra.mxu0 %v1598_v13  ;;  %1139 = vmatpush3.msra.mxu1 %v1598_v13  ;;  %194 = vst [vmem:[#allocation3] sm:$0x1] %v193_v23  ;;  %199 = vst [vmem:[#allocation3 + $0x1] sm:$0x1] %v198_v24  ;;  %v114_v28 = vadd.f32 %v1688_v27, %v107_v22  ;;  %v305_v37 = vld [vmem:[%s304_s9] sm:$0x1] }
  0x3e   :  { %1105 = vmatprep.subr.mxu0 %v1494_v0  ;;  %1140 = vmatprep.subr.mxu1 %v1494_v0  ;;  %204 = vst [vmem:[#allocation3 + $0x2] sm:$0x1] %v203_v25  ;;  %209 = vst [vmem:[#allocation3 + $0x3] sm:$0x1] %v208_v26  ;;  %v387_v44 = vld [vmem:[%s386_s3] sm:$0x1] }
  0x3f   :  { %1106 = vmatpush3.msra.mxu0 %v1604_v14  ;;  %1141 = vmatpush3.msra.mxu1 %v1604_v14  ;;  %s391_s12 = scalar_lea.vmem [#allocation9], %s932_s10  ;;  %s396_s13 = scalar_lea.vmem [#allocation9], %s933_s1 }
  0x40   :  { %1107 = vmatprep.subr.mxu0 %v1494_v0  ;;  %1142 = vmatprep.subr.mxu1 %v1494_v0  ;;  %v392_v45 = vld [vmem:[%s391_s12] sm:$0x1]  ;;  %s401_s14 = scalar_lea.vmem [#allocation9], %s934_s11  ;;  %s938_s18 = sld [smem:[#allocation5 + $0x13]] }
  0x41   :  { %1108 = vmatpush3.msra.mxu0 %v1610_v15  ;;  %1143 = vmatpush3.msra.mxu1 %v1610_v15  ;;  %v397_v46 = vld [vmem:[%s396_s13] sm:$0x1]  ;;  %s483_s19 = scalar_lea.vmem [#allocation9], %s935_s15  ;;  %s488_s20 = scalar_lea.vmem [#allocation9], %s936_s16 }
  0x42   :  { %1109 = vmatprep.subr.mxu0 %v1494_v0  ;;  %1144 = vmatprep.subr.mxu1 %v1494_v0  ;;  %v402_v47 = vld [vmem:[%s401_s14] sm:$0x1]  ;;  %s493_s21 = scalar_lea.vmem [#allocation9], %s937_s17  ;;  %s939_s23 = sld [smem:[#allocation5 + $0x14]] }
  0x43   :  { %1110 = vmatpush3.msra.mxu0 %v1616_v16  ;;  %1145 = vmatpush3.msra.mxu1 %v1616_v16  ;;  %v484_v54 = vld [vmem:[%s483_s19] sm:$0x1]  ;;  %s940_s0 = sld [smem:[#allocation5 + $0x15]]  ;;  %s1496_s19 = smov [#allocation12]  }
  0x44   :  { %1111 = vmatprep.subr.mxu0 %v1494_v0  ;;  %1146 = vmatprep.subr.mxu1 %v1494_v0  ;;  %v489_v55 = vld [vmem:[%s488_s20] sm:$0x1]  ;;  %s941_s26 = sld [smem:[#allocation5 + $0x16]]  ;;  %s874_s20 = sshll.u32 %s1496_s19, 4  ;;  %s875_s20 = int_to_ptr.vmem [resolvable:$true] %s874_s20 }
  0x45   :  { %1112 = vmatpush3.msra.mxu0 %v1622_v17  ;;  %1147 = vmatpush3.msra.mxu1 %v1622_v17  ;;  %v210_v33 = vld [vmem:[#allocation3] sm:$0xff]  ;;  %s942_s27 = sld [smem:[#allocation5 + $0x17]]  ;;  %p1465_p2 = scmp.lt.s32.totalorder %s875_s20, %s875_s20 }
  0x46   :  { %1113 = vmatprep.subr.mxu0 %v1494_v0  ;;  %1148 = vmatprep.subr.mxu1 %v1494_v0  ;;  %291 = vst [vmem:[#allocation3] sm:$0x1] %v290_v34  ;;  %296 = vst [vmem:[#allocation3 + $0x1] sm:$0x1] %v295_v35  ;;  %v211_v38 = vadd.f32 %v1688_v27, %v210_v33  ;;  %v494_v56 = vld [vmem:[%s493_s21] sm:$0x1] }
  0x47   :  { %1114 = vmatpush3.msra.mxu0 %v1628_v18  ;;  %1149 = vmatpush3.msra.mxu1 %v1628_v18  ;;  %301 = vst [vmem:[#allocation3 + $0x2] sm:$0x1] %v300_v36  ;;  %306 = vst [vmem:[#allocation3 + $0x3] sm:$0x1] %v305_v37  ;;  %s498_s22 = scalar_lea.vmem [#allocation9], %s938_s18  ;;  %s943_s6 = sld [smem:[#allocation5 + $0x18]] }
  0x48   :  { %1115 = vmatprep.subr.mxu0 %v1494_v0  ;;  %1150 = vmatprep.subr.mxu1 %v1494_v0  ;;  %v499_v57 = vld [vmem:[%s498_s22] sm:$0x1]  ;;  %s580_s4 = scalar_lea.vmem [#allocation9], %s939_s23  ;;  %s944_s7 = sld [smem:[#allocation5 + $0x19]] }
  0x49   :  { %1116 = vmatpush3.msra.mxu0 %v1634_v19  ;;  %1151 = vmatpush3.msra.mxu1 %v1634_v19  ;;  %v581_v6 = vld [vmem:[%s580_s4] sm:$0x1]  ;;  %s585_s28 = scalar_lea.vmem [#allocation9], %s940_s0  ;;  %s945_s8 = sld [smem:[#allocation5 + $0x1a]] }
  0x4a   :  { %1117 = vmatprep.subr.mxu0 %v1494_v0  ;;  %1152 = vmatprep.subr.mxu1 %v1494_v0  ;;  %v586_v7 = vld [vmem:[%s585_s28] sm:$0x1]  ;;  %s590_s29 = scalar_lea.vmem [#allocation9], %s941_s26  ;;  %s946_s9 = sld [smem:[#allocation5 + $0x1b]] }
  0x4b   :  { %1118 = vmatpush3.msra.mxu0 %v1640_v20  ;;  %1153 = vmatpush3.msra.mxu1 %v1640_v20  ;;  %v591_v8 = vld [vmem:[%s590_s29] sm:$0x1]  ;;  %s595_s30 = scalar_lea.vmem [#allocation9], %s942_s27  ;;  %s947_s3 = sld [smem:[#allocation5 + $0x1c]] }
  0x4c   :  { %1120 = vmatmul.mubr.f32.vlgmr.msra.gmra.mxu0 %v66_v21  ;;  %1157 = vmatprep.subr.mxu0 %v1494_v0  ;;  %v596_v9 = vld [vmem:[%s595_s30] sm:$0x1]  ;;  %s948_s12 = sld [smem:[#allocation5 + $0x1d]]  ;;  %s1460_s21 = scalar_lea.vmem %s875_s20, 1024 }
  0x4d   :  { %1158 = vmatpush3.msra.mxu0 %v1554_v1  ;;  %1189 = vmatprep.mubr.msk.f32.mxu0 %vm1495_vm0, %v1494_v0  ;;  %s677_s2 = scalar_lea.vmem [#allocation9], %s943_s6  ;;  %s949_s13 = sld [smem:[#allocation5 + $0x1e]] }
  0x4e   :  { %1159 = vmatprep.subr.mxu0 %v1494_v0  ;;  %1192 = vmatprep.subr.mxu1 %v1494_v0  ;;  %v307_v43 = vld [vmem:[#allocation3] sm:$0xff]  ;;  %s682_s10 = scalar_lea.vmem [#allocation9], %s944_s7  ;;  %s950_s14 = sld [smem:[#allocation5 + $0x1f]] }
  0x4f   :  { %1160 = vmatpush3.msra.mxu0 %v1556_v2  ;;  %388 = vst [vmem:[#allocation3] sm:$0x1] %v387_v44  ;;  %393 = vst [vmem:[#allocation3 + $0x1] sm:$0x1] %v392_v45  ;;  %v308_v48 = vadd.f32 %v1688_v27, %v307_v43  ;;  %s687_s1 = scalar_lea.vmem [#allocation9], %s945_s8  ;;  %p1461_p1 = scmp.ne.s32.totalorder %s875_s20, %s1460_s21 }
  0x50   :  { %1161 = vmatprep.subr.mxu0 %v1494_v0  ;;  %398 = vst [vmem:[#allocation3 + $0x2] sm:$0x1] %v397_v46  ;;  %403 = vst [vmem:[#allocation3 + $0x3] sm:$0x1] %v402_v47  ;;  %s692_s11 = scalar_lea.vmem [#allocation9], %s946_s9  ;;  %p1466_p3 = scmp.lt.s32.totalorder %s1460_s21, %s1460_s21 }
  0x51   :  { %1162 = vmatpush3.msra.mxu0 %v1561_v3  ;;  %s774_s15 = scalar_lea.vmem [#allocation9], %s947_s3 }
  0x52   :  { %1163 = vmatprep.subr.mxu0 %v1494_v0  ;;  %s779_s16 = scalar_lea.vmem [#allocation9], %s948_s12  ;;  %p1467_p4 = por %p1466_p3, %p1465_p2 }
  0x53   :  { %1164 = vmatpush3.msra.mxu0 %v1567_v4  ;;  %s784_s17 = scalar_lea.vmem [#allocation9], %s949_s13 }
  0x54   :  { %1165 = vmatprep.subr.mxu0 %v1494_v0  ;;  %s789_s18 = scalar_lea.vmem [#allocation9], %s950_s14  ;;  %p1468_p5 = pnand %p1467_p4, %p1461_p1 }
  0x55   :  { %1166 = vmatpush3.msra.mxu0 %v1571_v5 }
  0x56   :  { %1167 = vmatprep.subr.mxu0 %v1494_v0 }
  0x57   :  { %1168 = vmatpush3.msra.mxu0 %v1580_v10  ;;  %v404_v53 = vld [vmem:[#allocation3] sm:$0xff] }
  0x58   :  { %1169 = vmatprep.subr.mxu0 %v1494_v0  ;;  %485 = vst [vmem:[#allocation3] sm:$0x1] %v484_v54  ;;  %490 = vst [vmem:[#allocation3 + $0x1] sm:$0x1] %v489_v55  ;;  %v405_v58 = vadd.f32 %v1688_v27, %v404_v53 }
  0x59   :  { %1170 = vmatpush3.msra.mxu0 %v1586_v11  ;;  %495 = vst [vmem:[#allocation3 + $0x2] sm:$0x1] %v494_v56  ;;  %500 = vst [vmem:[#allocation3 + $0x3] sm:$0x1] %v499_v57 }
  0x5a   :  { %1171 = vmatprep.subr.mxu0 %v1494_v0 }
  0x5b   :  { %1172 = vmatpush3.msra.mxu0 %v1592_v12 }
  0x5c   :  { %1173 = vmatprep.subr.mxu0 %v1494_v0 }
  0x5d   :  { %1174 = vmatpush3.msra.mxu0 %v1598_v13 }
  0x5e   :  { %1175 = vmatprep.subr.mxu0 %v1494_v0 }
  0x5f   :  { %1176 = vmatpush3.msra.mxu0 %v1604_v14 }
  0x60   :  { %1177 = vmatprep.subr.mxu0 %v1494_v0  ;;  %v501_v63 = vld [vmem:[#allocation3] sm:$0xff] }
  0x61   :  { %1178 = vmatpush3.msra.mxu0 %v1610_v15  ;;  %582 = vst [vmem:[#allocation3] sm:$0x1] %v581_v6  ;;  %587 = vst [vmem:[#allocation3 + $0x1] sm:$0x1] %v586_v7  ;;  %v502_v21 = vadd.f32 %v1688_v27, %v501_v63 }
  0x62   :  { %1179 = vmatprep.subr.mxu0 %v1494_v0  ;;  %592 = vst [vmem:[#allocation3 + $0x2] sm:$0x1] %v591_v8  ;;  %597 = vst [vmem:[#allocation3 + $0x3] sm:$0x1] %v596_v9 }
  0x63   :  { %1180 = vmatpush3.msra.mxu0 %v1616_v16 }
  0x64   :  { %1181 = vmatprep.subr.mxu0 %v1494_v0 }
  0x65   :  { %1182 = vmatpush3.msra.mxu0 %v1622_v17 }
  0x66   :  { %1183 = vmatprep.subr.mxu0 %v1494_v0 }
  0x67   :  { %1184 = vmatpush3.msra.mxu0 %v1628_v18 }
  0x68   :  { %1185 = vmatprep.subr.mxu0 %v1494_v0 }
  0x69   :  { %1186 = vmatpush3.msra.mxu0 %v1634_v19 }
  0x6a   :  { %1187 = vmatprep.subr.mxu0 %v1494_v0 }
  0x6b   :  { %1188 = vmatpush3.msra.mxu0 %v1640_v20 }
  0x6c   :  { %1227 = vmatprep.subr.mxu0 %v1494_v0 }
 0x10c   :  { %v181_v29 = vpop.f32.mrf.mxu0 }
 0x10d   :  { %v185_v30 = vadd.f32 %v181_v29, %v114_v28 }
 0x10e   :  { %v1121_v31 = vpop.f32.mrf.mxu0 }
 0x10f   :  { %1376 = vtanh.f32 %v185_v30 }
 0x11c   :  { %v1377_v32 = vpop.eup %1376 }
 0x11d   :  { %187 = vst [vmem:[#allocation12] sm:$0xff] %v1377_v32  ;;  %1155 = vmatmul.mubr.f32.vlgmr.msra.gmra.mxu1 %v1377_v32 }
 0x11e   :  { %1193 = vmatpush3.msra.mxu1 %v1554_v1  ;;  %1224 = vmatprep.mubr.msk.f32.mxu1 %vm1495_vm0, %v1494_v0 }
 0x11f   :  { %1194 = vmatprep.subr.mxu1 %v1494_v0 }
 0x120   :  { %1195 = vmatpush3.msra.mxu1 %v1556_v2 }
 0x121   :  { %1196 = vmatprep.subr.mxu1 %v1494_v0 }
 0x122   :  { %1197 = vmatpush3.msra.mxu1 %v1561_v3 }
 0x123   :  { %1198 = vmatprep.subr.mxu1 %v1494_v0 }
 0x124   :  { %1199 = vmatpush3.msra.mxu1 %v1567_v4 }
 0x125   :  { %1200 = vmatprep.subr.mxu1 %v1494_v0 }
 0x126   :  { %1201 = vmatpush3.msra.mxu1 %v1571_v5 }
 0x127   :  { %1202 = vmatprep.subr.mxu1 %v1494_v0 }
 0x128   :  { %1203 = vmatpush3.msra.mxu1 %v1580_v10 }
 0x129   :  { %1204 = vmatprep.subr.mxu1 %v1494_v0 }
 0x12a   :  { %1205 = vmatpush3.msra.mxu1 %v1586_v11 }
 0x12b   :  { %1206 = vmatprep.subr.mxu1 %v1494_v0 }
 0x12c   :  { %1207 = vmatpush3.msra.mxu1 %v1592_v12 }
 0x12d   :  { %1208 = vmatprep.subr.mxu1 %v1494_v0 }
 0x12e   :  { %1209 = vmatpush3.msra.mxu1 %v1598_v13 }
 0x12f   :  { %1210 = vmatprep.subr.mxu1 %v1494_v0 }
 0x130   :  { %1211 = vmatpush3.msra.mxu1 %v1604_v14 }
 0x131   :  { %1212 = vmatprep.subr.mxu1 %v1494_v0 }
 0x132   :  { %1213 = vmatpush3.msra.mxu1 %v1610_v15 }
 0x133   :  { %1214 = vmatprep.subr.mxu1 %v1494_v0 }
 0x134   :  { %1215 = vmatpush3.msra.mxu1 %v1616_v16 }
 0x135   :  { %1216 = vmatprep.subr.mxu1 %v1494_v0 }
 0x136   :  { %1217 = vmatpush3.msra.mxu1 %v1622_v17 }
 0x137   :  { %1218 = vmatprep.subr.mxu1 %v1494_v0 }
 0x138   :  { %1219 = vmatpush3.msra.mxu1 %v1628_v18 }
 0x139   :  { %1220 = vmatprep.subr.mxu1 %v1494_v0 }
 0x13a   :  { %1221 = vmatpush3.msra.mxu1 %v1634_v19 }
 0x13b   :  { %1222 = vmatprep.subr.mxu1 %v1494_v0 }
 0x13c   :  { %1223 = vmatpush3.msra.mxu1 %v1640_v20 }
 0x13d   :  { %1262 = vmatprep.subr.mxu1 %v1494_v0 }
 0x1dd   :  { %v278_v39 = vpop.f32.mrf.mxu1 }
 0x1de   :  { %v282_v40 = vadd.f32 %v278_v39, %v211_v38 }
 0x1df   :  { %v1156_v41 = vpop.f32.mrf.mxu1 }
 0x1e0   :  { %1378 = vtanh.f32 %v282_v40 }
 0x1ed   :  { %v1379_v42 = vpop.eup %1378 }
 0x1ee   :  { %285 = vst [vmem:[#allocation12 + $0x8] sm:$0xff] %v1379_v42  ;;  %1190 = vmatmul.mubr.f32.vlgmr.msra.gmra.mxu0 %v1379_v42 }
 0x1ef   :  { %1228 = vmatpush3.msra.mxu0 %v1554_v1  ;;  %1259 = vmatprep.mubr.msk.f32.mxu0 %vm1495_vm0, %v1494_v0 }
 0x1f0   :  { %1229 = vmatprep.subr.mxu0 %v1494_v0 }
 0x1f1   :  { %1230 = vmatpush3.msra.mxu0 %v1556_v2 }
 0x1f2   :  { %1231 = vmatprep.subr.mxu0 %v1494_v0 }
 0x1f3   :  { %1232 = vmatpush3.msra.mxu0 %v1561_v3 }
 0x1f4   :  { %1233 = vmatprep.subr.mxu0 %v1494_v0 }
 0x1f5   :  { %1234 = vmatpush3.msra.mxu0 %v1567_v4 }
 0x1f6   :  { %1235 = vmatprep.subr.mxu0 %v1494_v0 }
 0x1f7   :  { %1236 = vmatpush3.msra.mxu0 %v1571_v5 }
 0x1f8   :  { %1237 = vmatprep.subr.mxu0 %v1494_v0 }
 0x1f9   :  { %1238 = vmatpush3.msra.mxu0 %v1580_v10 }
 0x1fa   :  { %1239 = vmatprep.subr.mxu0 %v1494_v0 }
 0x1fb   :  { %1240 = vmatpush3.msra.mxu0 %v1586_v11 }
 0x1fc   :  { %1241 = vmatprep.subr.mxu0 %v1494_v0 }
 0x1fd   :  { %1242 = vmatpush3.msra.mxu0 %v1592_v12 }
 0x1fe   :  { %1243 = vmatprep.subr.mxu0 %v1494_v0 }
 0x1ff   :  { %1244 = vmatpush3.msra.mxu0 %v1598_v13 }
 0x200   :  { %1245 = vmatprep.subr.mxu0 %v1494_v0 }
 0x201   :  { %1246 = vmatpush3.msra.mxu0 %v1604_v14 }
 0x202   :  { %1247 = vmatprep.subr.mxu0 %v1494_v0 }
 0x203   :  { %1248 = vmatpush3.msra.mxu0 %v1610_v15 }
 0x204   :  { %1249 = vmatprep.subr.mxu0 %v1494_v0 }
 0x205   :  { %1250 = vmatpush3.msra.mxu0 %v1616_v16 }
 0x206   :  { %1251 = vmatprep.subr.mxu0 %v1494_v0 }
 0x207   :  { %1252 = vmatpush3.msra.mxu0 %v1622_v17 }
 0x208   :  { %1253 = vmatprep.subr.mxu0 %v1494_v0 }
 0x209   :  { %1254 = vmatpush3.msra.mxu0 %v1628_v18 }
 0x20a   :  { %1255 = vmatprep.subr.mxu0 %v1494_v0 }
 0x20b   :  { %1256 = vmatpush3.msra.mxu0 %v1634_v19 }
 0x20c   :  { %1257 = vmatprep.subr.mxu0 %v1494_v0 }
 0x20d   :  { %1258 = vmatpush3.msra.mxu0 %v1640_v20 }
 0x20e   :  { %1297 = vmatprep.subr.mxu0 %v1494_v0 }
 0x2ae   :  { %v375_v49 = vpop.f32.mrf.mxu0 }
 0x2af   :  { %v379_v50 = vadd.f32 %v375_v49, %v308_v48 }
 0x2b0   :  { %v1191_v51 = vpop.f32.mrf.mxu0 }
 0x2b1   :  { %1380 = vtanh.f32 %v379_v50 }
 0x2be   :  { %v1381_v52 = vpop.eup %1380 }
 0x2bf   :  { %382 = vst [vmem:[#allocation12 + $0x10] sm:$0xff] %v1381_v52  ;;  %1225 = vmatmul.mubr.f32.vlgmr.msra.gmra.mxu1 %v1381_v52 }
 0x2c0   :  { %1263 = vmatpush3.msra.mxu1 %v1554_v1  ;;  %1294 = vmatprep.mubr.msk.f32.mxu1 %vm1495_vm0, %v1494_v0 }
 0x2c1   :  { %1264 = vmatprep.subr.mxu1 %v1494_v0 }
 0x2c2   :  { %1265 = vmatpush3.msra.mxu1 %v1556_v2 }
 0x2c3   :  { %1266 = vmatprep.subr.mxu1 %v1494_v0 }
 0x2c4   :  { %1267 = vmatpush3.msra.mxu1 %v1561_v3 }
 0x2c5   :  { %1268 = vmatprep.subr.mxu1 %v1494_v0 }
 0x2c6   :  { %1269 = vmatpush3.msra.mxu1 %v1567_v4 }
 0x2c7   :  { %1270 = vmatprep.subr.mxu1 %v1494_v0 }
 0x2c8   :  { %1271 = vmatpush3.msra.mxu1 %v1571_v5 }
 0x2c9   :  { %1272 = vmatprep.subr.mxu1 %v1494_v0 }
 0x2ca   :  { %1273 = vmatpush3.msra.mxu1 %v1580_v10 }
 0x2cb   :  { %1274 = vmatprep.subr.mxu1 %v1494_v0 }
 0x2cc   :  { %1275 = vmatpush3.msra.mxu1 %v1586_v11 }
 0x2cd   :  { %1276 = vmatprep.subr.mxu1 %v1494_v0 }
 0x2ce   :  { %1277 = vmatpush3.msra.mxu1 %v1592_v12 }
 0x2cf   :  { %1278 = vmatprep.subr.mxu1 %v1494_v0 }
 0x2d0   :  { %1279 = vmatpush3.msra.mxu1 %v1598_v13 }
 0x2d1   :  { %1280 = vmatprep.subr.mxu1 %v1494_v0 }
 0x2d2   :  { %1281 = vmatpush3.msra.mxu1 %v1604_v14 }
 0x2d3   :  { %1282 = vmatprep.subr.mxu1 %v1494_v0 }
 0x2d4   :  { %1283 = vmatpush3.msra.mxu1 %v1610_v15 }
 0x2d5   :  { %1284 = vmatprep.subr.mxu1 %v1494_v0 }
 0x2d6   :  { %1285 = vmatpush3.msra.mxu1 %v1616_v16 }
 0x2d7   :  { %1286 = vmatprep.subr.mxu1 %v1494_v0 }
 0x2d8   :  { %1287 = vmatpush3.msra.mxu1 %v1622_v17 }
 0x2d9   :  { %1288 = vmatprep.subr.mxu1 %v1494_v0 }
 0x2da   :  { %1289 = vmatpush3.msra.mxu1 %v1628_v18 }
 0x2db   :  { %1290 = vmatprep.subr.mxu1 %v1494_v0 }
 0x2dc   :  { %1291 = vmatpush3.msra.mxu1 %v1634_v19 }
 0x2dd   :  { %1292 = vmatprep.subr.mxu1 %v1494_v0 }
 0x2de   :  { %1293 = vmatpush3.msra.mxu1 %v1640_v20 }
 0x2df   :  { %1332 = vmatprep.subr.mxu1 %v1494_v0 }
 0x37f   :  { %v472_v59 = vpop.f32.mrf.mxu1 }
 0x380   :  { %v476_v60 = vadd.f32 %v472_v59, %v405_v58 }
 0x381   :  { %v1226_v61 = vpop.f32.mrf.mxu1 }
 0x382   :  { %1382 = vtanh.f32 %v476_v60 }
 0x38f   :  { %v1383_v62 = vpop.eup %1382 }
 0x390   :  { %479 = vst [vmem:[#allocation12 + $0x18] sm:$0xff] %v1383_v62  ;;  %1260 = vmatmul.mubr.f32.vlgmr.msra.gmra.mxu0 %v1383_v62 }
 0x391   :  { %1298 = vmatpush3.msra.mxu0 %v1554_v1  ;;  %1329 = vmatprep.mubr.msk.f32.mxu0 %vm1495_vm0, %v1494_v0 }
 0x392   :  { %1299 = vmatprep.subr.mxu0 %v1494_v0 }
 0x393   :  { %1300 = vmatpush3.msra.mxu0 %v1556_v2 }
 0x394   :  { %1301 = vmatprep.subr.mxu0 %v1494_v0 }
 0x395   :  { %1302 = vmatpush3.msra.mxu0 %v1561_v3 }
 0x396   :  { %1303 = vmatprep.subr.mxu0 %v1494_v0 }
 0x397   :  { %1304 = vmatpush3.msra.mxu0 %v1567_v4 }
 0x398   :  { %1305 = vmatprep.subr.mxu0 %v1494_v0 }
 0x399   :  { %1306 = vmatpush3.msra.mxu0 %v1571_v5 }
 0x39a   :  { %1307 = vmatprep.subr.mxu0 %v1494_v0 }
 0x39b   :  { %1308 = vmatpush3.msra.mxu0 %v1580_v10 }
 0x39c   :  { %1309 = vmatprep.subr.mxu0 %v1494_v0 }
 0x39d   :  { %1310 = vmatpush3.msra.mxu0 %v1586_v11 }
 0x39e   :  { %1311 = vmatprep.subr.mxu0 %v1494_v0 }
 0x39f   :  { %1312 = vmatpush3.msra.mxu0 %v1592_v12 }
 0x3a0   :  { %1313 = vmatprep.subr.mxu0 %v1494_v0 }
 0x3a1   :  { %1314 = vmatpush3.msra.mxu0 %v1598_v13 }
 0x3a2   :  { %1315 = vmatprep.subr.mxu0 %v1494_v0 }
 0x3a3   :  { %1316 = vmatpush3.msra.mxu0 %v1604_v14 }
 0x3a4   :  { %1317 = vmatprep.subr.mxu0 %v1494_v0 }
 0x3a5   :  { %1318 = vmatpush3.msra.mxu0 %v1610_v15 }
 0x3a6   :  { %1319 = vmatprep.subr.mxu0 %v1494_v0 }
 0x3a7   :  { %1320 = vmatpush3.msra.mxu0 %v1616_v16 }
 0x3a8   :  { %1321 = vmatprep.subr.mxu0 %v1494_v0 }
 0x3a9   :  { %1322 = vmatpush3.msra.mxu0 %v1622_v17 }
 0x3aa   :  { %1323 = vmatprep.subr.mxu0 %v1494_v0 }
 0x3ab   :  { %1324 = vmatpush3.msra.mxu0 %v1628_v18 }
 0x3ac   :  { %1325 = vmatprep.subr.mxu0 %v1494_v0 }
 0x3ad   :  { %1326 = vmatpush3.msra.mxu0 %v1634_v19 }
 0x3ae   :  { %1327 = vmatprep.subr.mxu0 %v1494_v0 }
 0x3af   :  { %1328 = vmatpush3.msra.mxu0 %v1640_v20 }
 0x450   :  { %v569_v22 = vpop.f32.mrf.mxu0 }
 0x451   :  { %v573_v23 = vadd.f32 %v569_v22, %v502_v21 }
 0x452   :  { %v1261_v24 = vpop.f32.mrf.mxu0 }
 0x453   :  { %1384 = vtanh.f32 %v573_v23 }
 0x460   :  { %v1385_v25 = vpop.eup %1384 }
 0x461   :  { %576 = vst [vmem:[#allocation12 + $0x20] sm:$0xff] %v1385_v25  ;;  %1295 = vmatmul.mubr.f32.vlgmr.msra.gmra.mxu1 %v1385_v25 }
 0x462   :  { %1333 = vmatpush3.msra.mxu1 %v1554_v1  ;;  %1364 = vmatprep.mubr.msk.f32.mxu1 %vm1495_vm0, %v1494_v0  ;;  %v598_v1 = vld [vmem:[#allocation3] sm:$0xff] }
 0x463   :  { %1334 = vmatprep.subr.mxu1 %v1494_v0 }
 0x464   :  { %1335 = vmatpush3.msra.mxu1 %v1556_v2  ;;  %v678_v2 = vld [vmem:[%s677_s2] sm:$0x1] }
 0x465   :  { %1336 = vmatprep.subr.mxu1 %v1494_v0  ;;  %679 = vst [vmem:[#allocation3] sm:$0x1] %v678_v2 }
 0x466   :  { %1337 = vmatpush3.msra.mxu1 %v1561_v3  ;;  %v683_v3 = vld [vmem:[%s682_s10] sm:$0x1] }
 0x467   :  { %1338 = vmatprep.subr.mxu1 %v1494_v0  ;;  %684 = vst [vmem:[#allocation3 + $0x1] sm:$0x1] %v683_v3 }
 0x468   :  { %1339 = vmatpush3.msra.mxu1 %v1567_v4  ;;  %v688_v4 = vld [vmem:[%s687_s1] sm:$0x1] }
 0x469   :  { %1340 = vmatprep.subr.mxu1 %v1494_v0  ;;  %689 = vst [vmem:[#allocation3 + $0x2] sm:$0x1] %v688_v4 }
 0x46a   :  { %1341 = vmatpush3.msra.mxu1 %v1571_v5  ;;  %v693_v5 = vld [vmem:[%s692_s11] sm:$0x1] }
 0x46b   :  { %1342 = vmatprep.subr.mxu1 %v1494_v0  ;;  %694 = vst [vmem:[#allocation3 + $0x3] sm:$0x1] %v693_v5 }
 0x46c   :  { %1343 = vmatpush3.msra.mxu1 %v1580_v10 }
 0x46d   :  { %1344 = vmatprep.subr.mxu1 %v1494_v0 }
 0x46e   :  { %1345 = vmatpush3.msra.mxu1 %v1586_v11 }
 0x46f   :  { %1346 = vmatprep.subr.mxu1 %v1494_v0 }
 0x470   :  { %1347 = vmatpush3.msra.mxu1 %v1592_v12 }
 0x471   :  { %1348 = vmatprep.subr.mxu1 %v1494_v0 }
 0x472   :  { %1349 = vmatpush3.msra.mxu1 %v1598_v13 }
 0x473   :  { %1350 = vmatprep.subr.mxu1 %v1494_v0 }
 0x474   :  { %1351 = vmatpush3.msra.mxu1 %v1604_v14  ;;  %v695_v14 = vld [vmem:[#allocation3] sm:$0xff] }
 0x475   :  { %1352 = vmatprep.subr.mxu1 %v1494_v0 }
 0x476   :  { %1353 = vmatpush3.msra.mxu1 %v1610_v15  ;;  %v775_v15 = vld [vmem:[%s774_s15] sm:$0x1] }
 0x477   :  { %1354 = vmatprep.subr.mxu1 %v1494_v0  ;;  %776 = vst [vmem:[#allocation3] sm:$0x1] %v775_v15 }
 0x478   :  { %1355 = vmatpush3.msra.mxu1 %v1616_v16  ;;  %v780_v16 = vld [vmem:[%s779_s16] sm:$0x1] }
 0x479   :  { %1356 = vmatprep.subr.mxu1 %v1494_v0  ;;  %781 = vst [vmem:[#allocation3 + $0x1] sm:$0x1] %v780_v16 }
 0x47a   :  { %1357 = vmatpush3.msra.mxu1 %v1622_v17  ;;  %v785_v17 = vld [vmem:[%s784_s17] sm:$0x1] }
 0x47b   :  { %1358 = vmatprep.subr.mxu1 %v1494_v0  ;;  %786 = vst [vmem:[#allocation3 + $0x2] sm:$0x1] %v785_v17 }
 0x47c   :  { %1359 = vmatpush3.msra.mxu1 %v1628_v18  ;;  %v790_v18 = vld [vmem:[%s789_s18] sm:$0x1] }
 0x47d   :  { %1360 = vmatprep.subr.mxu1 %v1494_v0  ;;  %791 = vst [vmem:[#allocation3 + $0x3] sm:$0x1] %v790_v18 }
 0x47e   :  { %1361 = vmatpush3.msra.mxu1 %v1634_v19  ;;  %v696_v19 = vadd.f32 %v1688_v27, %v695_v14 }
 0x47f   :  { %1362 = vmatprep.subr.mxu1 %v1494_v0  ;;  %v599_v0 = vadd.f32 %v1688_v27, %v598_v1 }
 0x480   :  { %1363 = vmatpush3.msra.mxu1 %v1640_v20 }
 0x484   :  { %v792_v30 = vld [vmem:[#allocation3] sm:$0xff] }
 0x485   :  { %v793_v31 = vadd.f32 %v1688_v27, %v792_v30 }
 0x521   :  { %v666_v10 = vpop.f32.mrf.mxu1 }
 0x522   :  { %v670_v11 = vadd.f32 %v666_v10, %v599_v0 }
 0x523   :  { %v1296_v12 = vpop.f32.mrf.mxu1 }
 0x524   :  { %1386 = vtanh.f32 %v670_v11 }
 0x531   :  { %v1387_v13 = vpop.eup %1386 }
 0x532   :  { %673 = vst [vmem:[#allocation12 + $0x28] sm:$0xff] %v1387_v13  ;;  %1330 = vmatmul.mubr.f32.vlgmr.msra.gmra.mxu0 %v1387_v13 }
 0x5f2   :  { %v763_v20 = vpop.f32.mrf.mxu0 }
 0x5f3   :  { %v767_v26 = vadd.f32 %v763_v20, %v696_v19 }
 0x5f4   :  { %v1331_v28 = vpop.f32.mrf.mxu0 }
 0x5f5   :  { %1388 = vtanh.f32 %v767_v26 }
 0x602   :  { %v1389_v29 = vpop.eup %1388 }
 0x603   :  { %770 = vst [vmem:[#allocation12 + $0x30] sm:$0xff] %v1389_v29  ;;  %1365 = vmatmul.mubr.f32.vlgmr.msra.gmra.mxu1 %v1389_v29 }
 0x6c3   :  { %v860_v32 = vpop.f32.mrf.mxu1 }
 0x6c4   :  { %v864_v33 = vadd.f32 %v860_v32, %v793_v31 }
 0x6c5   :  { %v1366_v34 = vpop.f32.mrf.mxu1 }
 0x6c6   :  { %1390 = vtanh.f32 %v864_v33 }
 0x6d3   :  { %v1391_v35 = vpop.eup %1390 }
 0x6d4   :  { %867 = vst [vmem:[#allocation12 + $0x38] sm:$0xff] %v1391_v35 }
 0x6d5   :  { %1471 = shalt.err (!%p1468_p5)
}
 0x6d6   :  { %880 = dma.vmem_to_hbm [thread:$0]  %s875_s20, 1024, %s1877_s5, [#allocation8], %s1490_s24, %s1490_s24, %s1491_s25  }
 0x6d7   :  { %1486 = dma.done.wait [#allocation8], 1024  }
 0x6d8   :  { %1487 = vsyncadd [#allocation8], 4294966272 }
 0x6d9   :  { %884 = vsyncpa [#allocation7], 1 }
 0x6da   :  { %885 = vsyncpa [#allocation10], 1 }
 0x6db   :  { %886 = vsyncpa [#allocation8], 1 }

</bundles_post_ra>
